<compile_context>
chip_gen: v7x
topology: tpu7x:2x2x1
jax: 0.10.0
libtpu: 0.0.40
codegen_flags: <defaults>
</compile_context>

<pallas_src>
import numpy as np
import jax
import jax.numpy as jnp
from jax.experimental import pallas as pl
from jax.experimental.pallas import tpu as pltpu


# ---------------------------------------------------------------------------
# Kernel: fused  relu(x @ w1 + b1) @ w2 + b2   with everything VMEM-resident.
# ---------------------------------------------------------------------------

def _fused_autoencoder_kernel(x_ref, w1_ref, b1_ref, w2_ref, b2_ref, o_ref):
    # x_ref:  (B, D)  f32   flattened image batch (bf16 cast done here, in-kernel)
    # w1_ref: (D, H)  bf16  encoder weight, pre-transposed to (in, out)
    # b1_ref: (1, H)  f32   encoder bias
    # w2_ref: (H, D)  bf16  decoder weight, pre-transposed to (in, out)
    # b2_ref: (1, D)  f32   decoder bias
    # o_ref:  (B, D)  f32   reconstructed (flattened) output
    x = x_ref[...].astype(jnp.bfloat16)

    # Encoder: MXU matmul with f32 accumulation; bias + ReLU in f32 on the VPU.
    h = jnp.dot(x, w1_ref[...], preferred_element_type=jnp.float32)
    h = jnp.maximum(h + b1_ref[...], 0.0)

    # Decoder: hidden activations back to bf16 for the second MXU pass.
    y = jnp.dot(h.astype(jnp.bfloat16), w2_ref[...],
                preferred_element_type=jnp.float32)
    o_ref[...] = y + b2_ref[...]


# ---------------------------------------------------------------------------
# Wrapper
# ---------------------------------------------------------------------------

def discriminator_forward(x, prepared, image_shape):
    """x: (B,) + image_shape (NCHW). Returns reconstructed (B,) + image_shape."""
    B = x.shape[0]
    w1p, b1p, w2p, b2p = (prepared["w1"], prepared["b1"],
                          prepared["w2"], prepared["b2"])
    D, H = w1p.shape

    # Flatten exactly like PyTorch's x.view(B, -1); no pad / no cast here
    # (the bf16 cast happens inside the kernel).
    x_flat = x.reshape(B, D).astype(jnp.float32)

    # Single fused call, grid=(1,), full-dim blocks (non-tile-aligned dims like
    # B=2 and H=400 are legal because each block equals the full array dim).
    y = pl.pallas_call(
        _fused_autoencoder_kernel,
        out_shape=jax.ShapeDtypeStruct((B, D), jnp.float32),
        grid=(1,),
        in_specs=[
            pl.BlockSpec((B, D), lambda i: (0, 0)),   # x
            pl.BlockSpec((D, H), lambda i: (0, 0)),   # w1 (in, out)
            pl.BlockSpec((1, H), lambda i: (0, 0)),   # b1
            pl.BlockSpec((H, D), lambda i: (0, 0)),   # w2 (in, out)
            pl.BlockSpec((1, D), lambda i: (0, 0)),   # b2
        ],
        out_specs=pl.BlockSpec((B, D), lambda i: (0, 0)),
        compiler_params=pltpu.CompilerParams(
            dimension_semantics=("arbitrary",),
        ),
    )(x_flat, w1p, b1p, w2p, b2p)

    return y.astype(x.dtype).reshape((B,) + tuple(image_shape))


# ---------------------------------------------------------------------------
# Parameter handling
# ---------------------------------------------------------------------------

def init_params(key, image_shape, hidden_dim=400, dtype=jnp.float32):
    """Synthetic params matching nn.Linear default init (PyTorch (out, in) layout)."""
    D = int(np.prod(image_shape))
    k1, k2, k3, k4 = jax.random.split(key, 4)
    bound1 = 1.0 / np.sqrt(D)
    bound2 = 1.0 / np.sqrt(hidden_dim)
    return {
        "w1": jax.random.uniform(k1, (hidden_dim, D), dtype, -bound1, bound1),
        "b1": jax.random.uniform(k2, (hidden_dim,), dtype, -bound1, bound1),
        "w2": jax.random.uniform(k3, (D, hidden_dim), dtype, -bound2, bound2),
        "b2": jax.random.uniform(k4, (D,), dtype, -bound2, bound2),
    }


def prepare_params(params):
    """One-time prep: transpose to (in, out) and cast weights to bf16.
    No hidden-dim padding: H=400 stays as-is in HBM (full-dim blocks), which
    saves ~22% of the weight-stream bytes vs padding to 512."""
    w1 = params["w1"]            # (H, D)  PyTorch (out, in)
    b1 = params["b1"]            # (H,)
    w2 = params["w2"]            # (D, H)
    b2 = params["b2"]            # (D,)
    return {
        "w1": jnp.asarray(w1.T, jnp.bfloat16),          # (D, H)
        "b1": jnp.asarray(b1, jnp.float32)[None, :],    # (1, H)
        "w2": jnp.asarray(w2.T, jnp.bfloat16),          # (H, D)
        "b2": jnp.asarray(b2, jnp.float32)[None, :],    # (1, D)
    }


if __name__ == "__main__":
    image_shape = (4, 16, 16)   # (C, H, W) -> D = 1024
    B = 2
    hidden_dim = 400            # same as the PyTorch module

    key = jax.random.PRNGKey(0)
    kx, kp = jax.random.split(key)
    x = jax.random.normal(kx, (B,) + image_shape, jnp.float32)
    params = init_params(kp, image_shape, hidden_dim)
    prepared = prepare_params(params)   # one-time transpose / bf16 cast

    fwd = jax.jit(discriminator_forward, static_argnames=("image_shape",))
    out = fwd(x, prepared, image_shape=image_shape)
    out = jax.block_until_ready(out)
    assert out.shape == (B,) + image_shape

    # Pure-JAX f32 reference of the PyTorch forward semantics.
    x_flat = x.reshape(B, -1)
    ref = jnp.maximum(x_flat @ params["w1"].T + params["b1"], 0.0) @ params["w2"].T + params["b2"]
    ref = ref.reshape((B,) + image_shape)
    # bf16 weight/activation storage (f32 accumulation) -> bf16-level tolerance.
    assert jnp.allclose(out, ref, atol=3e-2, rtol=3e-2), "mismatch vs reference"

    print("KERNEL_OK")
</pallas_src>

<mosaic_0001>
module attributes {stable_mosaic.version = 11 : i64} {
  func.func @_fused_autoencoder_kernel(%arg0: i32, %arg1: memref<2x1024xf32, #tpu.memory_space<vmem>>, %arg2: memref<1024x400xbf16, #tpu.memory_space<vmem>>, %arg3: memref<1x400xf32, #tpu.memory_space<vmem>>, %arg4: memref<400x1024xbf16, #tpu.memory_space<vmem>>, %arg5: memref<1x1024xf32, #tpu.memory_space<vmem>>, %arg6: memref<2x1024xf32, #tpu.memory_space<vmem>>) attributes {dimension_semantics = [#tpu.dimension_semantics<arbitrary>], iteration_bounds = array<i64: 1>, scalar_prefetch = 0 : i64, scratch_operands = 0 : i64, tpu.core_type = #tpu.core_type<tc>, window_params = [{pipeline_mode = #tpu.pipeline_mode<synchronous>, transform_indices = @transform_0, window_bounds = array<i64: 2, 1024>}, {pipeline_mode = #tpu.pipeline_mode<synchronous>, transform_indices = @transform_1, window_bounds = array<i64: 1024, 400>}, {pipeline_mode = #tpu.pipeline_mode<synchronous>, transform_indices = @transform_2, window_bounds = array<i64: 1, 400>}, {pipeline_mode = #tpu.pipeline_mode<synchronous>, transform_indices = @transform_3, window_bounds = array<i64: 400, 1024>}, {pipeline_mode = #tpu.pipeline_mode<synchronous>, transform_indices = @transform_4, window_bounds = array<i64: 1, 1024>}, {pipeline_mode = #tpu.pipeline_mode<synchronous>, transform_indices = @transform_5, window_bounds = array<i64: 2, 1024>}]} {
    %c0 = arith.constant 0 : index
    %c0_0 = arith.constant 0 : index
    %0 = vector.load %arg1[%c0, %c0_0] : memref<2x1024xf32, #tpu.memory_space<vmem>>, vector<2x1024xf32>
    %1 = arith.truncf %0 : vector<2x1024xf32> to vector<2x1024xbf16>
    %c0_1 = arith.constant 0 : index
    %c0_2 = arith.constant 0 : index
    %2 = vector.load %arg2[%c0_1, %c0_2] : memref<1024x400xbf16, #tpu.memory_space<vmem>>, vector<1024x400xbf16>
    %cst = arith.constant dense<0.000000e+00> : vector<2x400xf32>
    %3 = tpu.matmul %1, %2, %cst {dimension_numbers = #tpu.dot_dimension_numbers<[1], [0], [0], [1], [0, 0, 1, 1], [], []>} : vector<2x1024xbf16>, vector<1024x400xbf16>, vector<2x400xf32> -> vector<2x400xf32>
    %c0_3 = arith.constant 0 : index
    %c0_4 = arith.constant 0 : index
    %4 = vector.load %arg3[%c0_3, %c0_4] : memref<1x400xf32, #tpu.memory_space<vmem>>, vector<1x400xf32>
    %5 = vector.broadcast %4 : vector<1x400xf32> to vector<2x400xf32>
    %6 = arith.addf %3, %5 : vector<2x400xf32>
    %cst_5 = arith.constant 0.000000e+00 : f32
    %7 = vector.broadcast %cst_5 : f32 to vector<2x400xf32>
    %8 = arith.maximumf %6, %7 : vector<2x400xf32>
    %9 = arith.truncf %8 : vector<2x400xf32> to vector<2x400xbf16>
    %c0_6 = arith.constant 0 : index
    %c0_7 = arith.constant 0 : index
    %10 = vector.load %arg4[%c0_6, %c0_7] : memref<400x1024xbf16, #tpu.memory_space<vmem>>, vector<400x1024xbf16>
    %cst_8 = arith.constant dense<0.000000e+00> : vector<2x1024xf32>
    %11 = tpu.matmul %9, %10, %cst_8 {dimension_numbers = #tpu.dot_dimension_numbers<[1], [0], [0], [1], [0, 0, 1, 1], [], []>} : vector<2x400xbf16>, vector<400x1024xbf16>, vector<2x1024xf32> -> vector<2x1024xf32>
    %c0_9 = arith.constant 0 : index
    %c0_10 = arith.constant 0 : index
    %12 = vector.load %arg5[%c0_9, %c0_10] : memref<1x1024xf32, #tpu.memory_space<vmem>>, vector<1x1024xf32>
    %13 = vector.broadcast %12 : vector<1x1024xf32> to vector<2x1024xf32>
    %14 = arith.addf %11, %13 : vector<2x1024xf32>
    %c0_11 = arith.constant 0 : index
    %c0_12 = arith.constant 0 : index
    %15 = vector.load %arg6[%c0_11, %c0_12] : memref<2x1024xf32, #tpu.memory_space<vmem>>, vector<2x1024xf32>
    tpu.vector_store %arg6[%c0_11, %c0_12], %14 {strides = array<i32>} : memref<2x1024xf32, #tpu.memory_space<vmem>>, vector<2x1024xf32>,
    return
  }
  func.func @transform_0(%arg0: i32) -> (i32, i32) {
    %c0_i32 = arith.constant 0 : i32
    %c0_i32_0 = arith.constant 0 : i32
    %c0_i32_1 = arith.constant 0 : i32
    return %c0_i32, %c0_i32_0 : i32, i32
  }
  func.func @transform_1(%arg0: i32) -> (i32, i32) {
    %c0_i32 = arith.constant 0 : i32
    %c0_i32_0 = arith.constant 0 : i32
    %c0_i32_1 = arith.constant 0 : i32
    return %c0_i32, %c0_i32_0 : i32, i32
  }
  func.func @transform_2(%arg0: i32) -> (i32, i32) {
    %c0_i32 = arith.constant 0 : i32
    %c0_i32_0 = arith.constant 0 : i32
    %c0_i32_1 = arith.constant 0 : i32
    return %c0_i32, %c0_i32_0 : i32, i32
  }
  func.func @transform_3(%arg0: i32) -> (i32, i32) {
    %c0_i32 = arith.constant 0 : i32
    %c0_i32_0 = arith.constant 0 : i32
    %c0_i32_1 = arith.constant 0 : i32
    return %c0_i32, %c0_i32_0 : i32, i32
  }
  func.func @transform_4(%arg0: i32) -> (i32, i32) {
    %c0_i32 = arith.constant 0 : i32
    %c0_i32_0 = arith.constant 0 : i32
    %c0_i32_1 = arith.constant 0 : i32
    return %c0_i32, %c0_i32_0 : i32, i32
  }
  func.func @transform_5(%arg0: i32) -> (i32, i32) {
    %c0_i32 = arith.constant 0 : i32
    %c0_i32_0 = arith.constant 0 : i32
    %c0_i32_1 = arith.constant 0 : i32
    return %c0_i32, %c0_i32_0 : i32, i32
  }
}

</mosaic_0001>

<bundles_post_ra>
// kernel: discriminator_forward.1
= control target key start
LH: loop header
LB: loop body
LE: loop exit
PB: predicated region body
PF: predicated region fallthrough
CT: control target
= control target key end

     0   :  { %v4492_v36 = vmov 1983009808   ;;  %v29_v38 = vlaneseq  ;;  %vm3211_vm0 = vcmask 130048   ;;  %s6006_s1 = inlined_call_operand.vmem [shape: bf16[1024,400], index: 1, kind: input, shape index: {}]   ;;  %s6007_s0 = inlined_call_operand.vmem [shape: f32[2,1024], index: 0, kind: input, shape index: {}]   ;;  %s6008_s3 = inlined_call_operand.vmem [shape: bf16[400,1024], index: 3, kind: input, shape index: {}]   ;;  %s6009_s2 = inlined_call_operand.vmem [shape: f32[1,400], index: 2, kind: input, shape index: {}]   ;;  %s6010_s4 = inlined_call_operand.vmem [shape: f32[1,1024], index: 4, kind: input, shape index: {}]   ;;  %s6011_s5 = inlined_call_operand.vmem [shape: f32[2,1024], index: 5, kind: output, shape index: {}]  }
   0x1   :  { %v4106_v0 = vld [vmem:[%s6006_s1 + $0x4] ss:$16 sps:$4 sm:$0xff]   ;;  %v4108_v1 = vld [vmem:[%s6006_s1 + $0xc] ss:$16 sps:$4 sm:$0xff]   ;;  %v4110_v2 = vld [vmem:[%s6006_s1] ss:$16 sps:$4 sm:$0xff]   ;;  %v27_v37 = vunpack.c.l.s4 %v4492_v36 }
   0x2   :  { %1633 = vmatprep.subr.bf16.mxu0 %v4106_v0  ;;  %v4111_v3 = vld [vmem:[%s6006_s1 + $0x8] ss:$16 sps:$4 sm:$0xff]   ;;  %1797 = vmatprep.subr.bf16.mxu1 %v4108_v1  ;;  %v4112_v4 = vld [vmem:[%s6006_s1 + $0x24] ss:$16 sps:$4 sm:$0xff]   ;;  %v4114_v5 = vld [vmem:[%s6006_s1 + $0x2c] ss:$16 sps:$4 sm:$0xff]  }
   0x3   :  { %1634 = vmatpush1.bf16.msra.mxu0 %v4110_v2  ;;  %1798 = vmatpush1.bf16.msra.mxu1 %v4111_v3  ;;  %v4116_v6 = vld [vmem:[%s6006_s1 + $0x20] ss:$16 sps:$4 sm:$0xff]   ;;  %v4117_v7 = vld [vmem:[%s6006_s1 + $0x28] ss:$16 sps:$4 sm:$0xff]   ;;  %v4118_v8 = vld [vmem:[%s6006_s1 + $0x44] ss:$16 sps:$4 sm:$0xff]   ;;  %v28_v42 = vunpack.c.0.s8 %v27_v37 }
   0x4   :  { %1635 = vmatprep.subr.bf16.mxu0 %v4112_v4  ;;  %1799 = vmatprep.subr.bf16.mxu1 %v4114_v5  ;;  %v4120_v9 = vld [vmem:[%s6006_s1 + $0x4c] ss:$16 sps:$4 sm:$0xff]   ;;  %v4122_v10 = vld [vmem:[%s6006_s1 + $0x40] ss:$16 sps:$4 sm:$0xff]   ;;  %v4123_v11 = vld [vmem:[%s6006_s1 + $0x48] ss:$16 sps:$4 sm:$0xff]  }
   0x5   :  { %v4124_v12 = vld [vmem:[%s6006_s1 + $0x64] ss:$16 sps:$4 sm:$0xff]   ;;  %v4126_v13 = vld [vmem:[%s6006_s1 + $0x6c] ss:$16 sps:$4 sm:$0xff]   ;;  %v4128_v14 = vld [vmem:[%s6006_s1 + $0x60] ss:$16 sps:$4 sm:$0xff]  }
   0x6   :  { %v4129_v15 = vld [vmem:[%s6006_s1 + $0x68] ss:$16 sps:$4 sm:$0xff]   ;;  %v4130_v16 = vld [vmem:[%s6006_s1 + $0x84] ss:$16 sps:$4 sm:$0xff]   ;;  %v4132_v17 = vld [vmem:[%s6006_s1 + $0x8c] ss:$16 sps:$4 sm:$0xff]  }
   0x7   :  { %1636 = vmatpush1.bf16.msra.mxu0 %v4116_v6  ;;  %1800 = vmatpush1.bf16.msra.mxu1 %v4117_v7  ;;  %v4134_v18 = vld [vmem:[%s6006_s1 + $0x80] ss:$16 sps:$4 sm:$0xff]   ;;  %v4135_v19 = vld [vmem:[%s6006_s1 + $0x88] ss:$16 sps:$4 sm:$0xff]   ;;  %v4136_v20 = vld [vmem:[%s6006_s1 + $0xa4] ss:$16 sps:$4 sm:$0xff]  }
   0x8   :  { %1637 = vmatprep.subr.bf16.mxu0 %v4118_v8  ;;  %1801 = vmatprep.subr.bf16.mxu1 %v4120_v9  ;;  %v4138_v21 = vld [vmem:[%s6006_s1 + $0xac] ss:$16 sps:$4 sm:$0xff]   ;;  %v4140_v22 = vld [vmem:[%s6006_s1 + $0xa0] ss:$16 sps:$4 sm:$0xff]   ;;  %v4141_v23 = vld [vmem:[%s6006_s1 + $0xa8] ss:$16 sps:$4 sm:$0xff]  }
   0x9   :  { %v4142_v24 = vld [vmem:[%s6006_s1 + $0xc4] ss:$16 sps:$4 sm:$0xff]   ;;  %v4144_v25 = vld [vmem:[%s6006_s1 + $0xcc] ss:$16 sps:$4 sm:$0xff]   ;;  %v4146_v26 = vld [vmem:[%s6006_s1 + $0xc0] ss:$16 sps:$4 sm:$0xff]  }
   0xa   :  { %v4147_v27 = vld [vmem:[%s6006_s1 + $0xc8] ss:$16 sps:$4 sm:$0xff]   ;;  %v4148_v28 = vld [vmem:[%s6006_s1 + $0xe4] ss:$16 sps:$4 sm:$0xff]   ;;  %v4150_v29 = vld [vmem:[%s6006_s1 + $0xec] ss:$16 sps:$4 sm:$0xff]  }
   0xb   :  { %1638 = vmatpush1.bf16.msra.mxu0 %v4122_v10  ;;  %1802 = vmatpush1.bf16.msra.mxu1 %v4123_v11  ;;  %v4152_v30 = vld [vmem:[%s6006_s1 + $0xe0] ss:$16 sps:$4 sm:$0xff]   ;;  %v4153_v31 = vld [vmem:[%s6006_s1 + $0xe8] ss:$16 sps:$4 sm:$0xff]   ;;  %v4154_v32 = vld [vmem:[%s6006_s1 + $0x104] ss:$16 sps:$4 sm:$0xff]  }
   0xc   :  { %1639 = vmatprep.subr.bf16.mxu0 %v4124_v12  ;;  %1803 = vmatprep.subr.bf16.mxu1 %v4126_v13  ;;  %v4156_v33 = vld [vmem:[%s6006_s1 + $0x10c] ss:$16 sps:$4 sm:$0xff]   ;;  %v4158_v34 = vld [vmem:[%s6006_s1 + $0x100] ss:$16 sps:$4 sm:$0xff]   ;;  %v4159_v35 = vld [vmem:[%s6006_s1 + $0x108] ss:$16 sps:$4 sm:$0xff]  }
   0xd   :  { %v4160_v39 = vld [vmem:[%s6006_s1 + $0x124] ss:$16 sps:$4 sm:$0xff]   ;;  %v4162_v40 = vld [vmem:[%s6006_s1 + $0x12c] ss:$16 sps:$4 sm:$0xff]   ;;  %v4164_v41 = vld [vmem:[%s6006_s1 + $0x120] ss:$16 sps:$4 sm:$0xff]  }
   0xe   :  { %v4640_v43 = vshrl.u32 %v29_v38, 7  ;;  %v4165_v44 = vld [vmem:[%s6006_s1 + $0x128] ss:$16 sps:$4 sm:$0xff]   ;;  %v4166_v45 = vld [vmem:[%s6006_s1 + $0x144] ss:$16 sps:$4 sm:$0xff]  }
   0xf   :  { %1640 = vmatpush1.bf16.msra.mxu0 %v4128_v14  ;;  %1804 = vmatpush1.bf16.msra.mxu1 %v4129_v15  ;;  %v4168_v46 = vld [vmem:[%s6006_s1 + $0x14c] ss:$16 sps:$4 sm:$0xff]   ;;  %v4170_v47 = vld [vmem:[%s6006_s1 + $0x140] ss:$16 sps:$4 sm:$0xff]   ;;  %v4171_v48 = vld [vmem:[%s6006_s1 + $0x148] ss:$16 sps:$4 sm:$0xff]  }
  0x10   :  { %1641 = vmatprep.subr.bf16.mxu0 %v4130_v16  ;;  %1805 = vmatprep.subr.bf16.mxu1 %v4132_v17  ;;  %v4658_v49 = vsub.s32 %v28_v42, %v4640_v43  ;;  %v4172_v50 = vld [vmem:[%s6006_s1 + $0x164] ss:$16 sps:$4 sm:$0xff]   ;;  %v4174_v51 = vld [vmem:[%s6006_s1 + $0x16c] ss:$16 sps:$4 sm:$0xff]   ;;  %v4176_v54 = vld [vmem:[%s6006_s1 + $0x160] ss:$16 sps:$4 sm:$0xff]  }
  0x11   :  { %v21_v52 = vld [vmem:[%s6007_s0] sm:$0xff]  ;;  %v4177_v55 = vld [vmem:[%s6006_s1 + $0x168] ss:$16 sps:$4 sm:$0xff]   ;;  %v4180_v57 = vld [vmem:[%s6006_s1 + $0x18c] ss:$16 sps:$4 sm:$0xff]  }
  0x12   :  { %v32_v53 = vrot.slane %v21_v52, %v4658_v49  ;;  %v4178_v56 = vld [vmem:[%s6006_s1 + $0x184] ss:$16 sps:$4 sm:$0xff]   ;;  %v4182_v60 = vld [vmem:[%s6006_s1 + $0x180] ss:$16 sps:$4 sm:$0xff]   ;;  %v4183_v61 = vld [vmem:[%s6006_s1 + $0x188] ss:$16 sps:$4 sm:$0xff]   ;;  %v25_v4 = vcombine.high %v21_v52, %v21_v52 }
  0x13   :  { %1642 = vmatpush1.bf16.msra.mxu0 %v4134_v18  ;;  %1806 = vmatpush1.bf16.msra.mxu1 %v4135_v19  ;;  %v4184_v62 = vld [vmem:[%s6006_s1 + $0x1a4] ss:$16 sps:$4 sm:$0xff]   ;;  %v4186_v63 = vld [vmem:[%s6006_s1 + $0x1ac] ss:$16 sps:$4 sm:$0xff]   ;;  %v4188_v0 = vld [vmem:[%s6006_s1 + $0x1a0] ss:$16 sps:$4 sm:$0xff]  }
  0x14   :  { %1643 = vmatprep.subr.bf16.mxu0 %v4136_v20  ;;  %1807 = vmatprep.subr.bf16.mxu1 %v4138_v21  ;;  %v40_v58 = vcombine.high %v32_v53, %v32_v53  ;;  %v4189_v1 = vld [vmem:[%s6006_s1 + $0x1a8] ss:$16 sps:$4 sm:$0xff]   ;;  %v4190_v2 = vld [vmem:[%s6006_s1 + $0x1c4] ss:$16 sps:$4 sm:$0xff]   ;;  %v4192_v3 = vld [vmem:[%s6006_s1 + $0x1cc] ss:$16 sps:$4 sm:$0xff]   ;;  %v4719_v9 = vrot.slane %v25_v4, %v4658_v49  ;;  %v67_v15 = vpack.c.bf16 %v32_v53, %v32_v53 }
  0x15   :  { %v4194_v5 = vld [vmem:[%s6006_s1 + $0x1c0] ss:$16 sps:$4 sm:$0xff]   ;;  %v4195_v6 = vld [vmem:[%s6006_s1 + $0x1c8] ss:$16 sps:$4 sm:$0xff]   ;;  %v4196_v7 = vld [vmem:[%s6006_s1 + $0x1e4] ss:$16 sps:$4 sm:$0xff]  }
  0x16   :  { %v68_v59 = vpack.c.bf16 %v40_v58, %v40_v58  ;;  %v4198_v8 = vld [vmem:[%s6006_s1 + $0x1ec] ss:$16 sps:$4 sm:$0xff]   ;;  %v4200_v10 = vld [vmem:[%s6006_s1 + $0x1e0] ss:$16 sps:$4 sm:$0xff]   ;;  %v4201_v11 = vld [vmem:[%s6006_s1 + $0x1e8] ss:$16 sps:$4 sm:$0xff]   ;;  %v41_v14 = vcombine.high %v4719_v9, %v4719_v9 }
  0x17   :  { %1644 = vmatpush1.bf16.msra.mxu0 %v4140_v22  ;;  %1808 = vmatpush1.bf16.msra.mxu1 %v4141_v23  ;;  %v4206_v12 = vld [vmem:[%s6006_s1 + $0x204] ss:$16 sps:$4 sm:$0xff]   ;;  %v4209_v13 = vld [vmem:[%s6006_s1 + $0x20c] ss:$16 sps:$4 sm:$0xff]   ;;  %v4204_v16 = vld [vmem:[%s6006_s1 + $0x200] ss:$16 sps:$4 sm:$0xff]  }
  0x18   :  { %1645 = vmatprep.subr.bf16.mxu0 %v4142_v24  ;;  %1809 = vmatprep.subr.bf16.mxu1 %v4144_v25  ;;  %v4207_v17 = vld [vmem:[%s6006_s1 + $0x208] ss:$16 sps:$4 sm:$0xff]   ;;  %v4212_v18 = vld [vmem:[%s6006_s1 + $0x224] ss:$16 sps:$4 sm:$0xff]   ;;  %v4215_v19 = vld [vmem:[%s6006_s1 + $0x22c] ss:$16 sps:$4 sm:$0xff]   ;;  %v70_v20 = vpack.c.bf16 %v41_v14, %v41_v14 }
  0x19   :  { %1665 = vmatprep.mubr.bf16.mxu0 %v68_v59  ;;  %1829 = vmatprep.mubr.bf16.mxu1 %v68_v59  ;;  %v4210_v21 = vld [vmem:[%s6006_s1 + $0x220] ss:$16 sps:$4 sm:$0xff]   ;;  %v4213_v22 = vld [vmem:[%s6006_s1 + $0x228] ss:$16 sps:$4 sm:$0xff]   ;;  %v4218_v23 = vld [vmem:[%s6006_s1 + $0x244] ss:$16 sps:$4 sm:$0xff]  }
  0x1a   :  { %v4221_v24 = vld [vmem:[%s6006_s1 + $0x24c] ss:$16 sps:$4 sm:$0xff]   ;;  %v4216_v25 = vld [vmem:[%s6006_s1 + $0x240] ss:$16 sps:$4 sm:$0xff]   ;;  %v4237_v38 = vld [vmem:[%s6006_s1 + $0x2a8] ss:$16 sps:$4 sm:$0xff]  }
  0x1b   :  { %1646 = vmatpush1.bf16.msra.mxu0 %v4146_v26  ;;  %1810 = vmatpush1.bf16.msra.mxu1 %v4147_v27  ;;  %v4219_v26 = vld [vmem:[%s6006_s1 + $0x248] ss:$16 sps:$4 sm:$0xff]   ;;  %v4224_v27 = vld [vmem:[%s6006_s1 + $0x264] ss:$16 sps:$4 sm:$0xff]   ;;  %v4239_v36 = vld [vmem:[%s6006_s1 + $0x2ac] ss:$16 sps:$4 sm:$0xff]  }
  0x1c   :  { %1647 = vmatprep.subr.bf16.mxu0 %v4148_v28  ;;  %1811 = vmatprep.subr.bf16.mxu1 %v4150_v29  ;;  %v4227_v28 = vld [vmem:[%s6006_s1 + $0x26c] ss:$16 sps:$4 sm:$0xff]   ;;  %v4222_v29 = vld [vmem:[%s6006_s1 + $0x260] ss:$16 sps:$4 sm:$0xff]   ;;  %v4243_v42 = vld [vmem:[%s6006_s1 + $0x2c8] ss:$16 sps:$4 sm:$0xff]  }
  0x1d   :  { %v4234_v37 = vld [vmem:[%s6006_s1 + $0x2a0] ss:$16 sps:$4 sm:$0xff]   ;;  %v4255_v52 = vld [vmem:[%s6006_s1 + $0x308] ss:$16 sps:$4 sm:$0xff]   ;;  %v4260_v53 = vld [vmem:[%s6006_s1 + $0x324] ss:$16 sps:$4 sm:$0xff]  }
  0x1e   :  { %v4269_v58 = vld [vmem:[%s6006_s1 + $0x34c] ss:$16 sps:$4 sm:$0xff]   ;;  %v4264_v59 = vld [vmem:[%s6006_s1 + $0x340] ss:$16 sps:$4 sm:$0xff]   ;;  %v4279_v4 = vld [vmem:[%s6006_s1 + $0x388] ss:$16 sps:$4 sm:$0xff]  }
  0x1f   :  { %1648 = vmatpush1.bf16.msra.mxu0 %v4152_v30  ;;  %1812 = vmatpush1.bf16.msra.mxu1 %v4153_v31  ;;  %v4225_v30 = vld [vmem:[%s6006_s1 + $0x268] ss:$16 sps:$4 sm:$0xff]   ;;  %v4230_v31 = vld [vmem:[%s6006_s1 + $0x284] ss:$16 sps:$4 sm:$0xff]  }
  0x20   :  { %1649 = vmatprep.subr.bf16.mxu0 %v4154_v32  ;;  %1813 = vmatprep.subr.bf16.mxu1 %v4156_v33  ;;  %v4233_v32 = vld [vmem:[%s6006_s1 + $0x28c] ss:$16 sps:$4 sm:$0xff]   ;;  %v4228_v33 = vld [vmem:[%s6006_s1 + $0x280] ss:$16 sps:$4 sm:$0xff]   ;;  %v4291_v14 = vld [vmem:[%s6006_s1 + $0x3c8] ss:$16 sps:$4 sm:$0xff]  }
  0x23   :  { %1650 = vmatpush1.bf16.msra.mxu0 %v4158_v34  ;;  %1814 = vmatpush1.bf16.msra.mxu1 %v4159_v35  ;;  %v4231_v34 = vld [vmem:[%s6006_s1 + $0x288] ss:$16 sps:$4 sm:$0xff]   ;;  %v4236_v35 = vld [vmem:[%s6006_s1 + $0x2a4] ss:$16 sps:$4 sm:$0xff]  }
  0x24   :  { %1651 = vmatprep.subr.bf16.mxu0 %v4160_v39  ;;  %1815 = vmatprep.subr.bf16.mxu1 %v4162_v40  ;;  %v4242_v39 = vld [vmem:[%s6006_s1 + $0x2c4] ss:$16 sps:$4 sm:$0xff]   ;;  %v4245_v40 = vld [vmem:[%s6006_s1 + $0x2cc] ss:$16 sps:$4 sm:$0xff]  }
  0x27   :  { %1652 = vmatpush1.bf16.msra.mxu0 %v4164_v41  ;;  %1816 = vmatpush1.bf16.msra.mxu1 %v4165_v44  ;;  %v4240_v41 = vld [vmem:[%s6006_s1 + $0x2c0] ss:$16 sps:$4 sm:$0xff]   ;;  %v4248_v44 = vld [vmem:[%s6006_s1 + $0x2e4] ss:$16 sps:$4 sm:$0xff]  }
  0x28   :  { %1653 = vmatprep.subr.bf16.mxu0 %v4166_v45  ;;  %1817 = vmatprep.subr.bf16.mxu1 %v4168_v46  ;;  %v4251_v45 = vld [vmem:[%s6006_s1 + $0x2ec] ss:$16 sps:$4 sm:$0xff]   ;;  %v4246_v46 = vld [vmem:[%s6006_s1 + $0x2e0] ss:$16 sps:$4 sm:$0xff]  }
  0x2b   :  { %1654 = vmatpush1.bf16.msra.mxu0 %v4170_v47  ;;  %1818 = vmatpush1.bf16.msra.mxu1 %v4171_v48  ;;  %v4249_v47 = vld [vmem:[%s6006_s1 + $0x2e8] ss:$16 sps:$4 sm:$0xff]   ;;  %v4254_v48 = vld [vmem:[%s6006_s1 + $0x304] ss:$16 sps:$4 sm:$0xff]  }
  0x2c   :  { %1655 = vmatprep.subr.bf16.mxu0 %v4172_v50  ;;  %1819 = vmatprep.subr.bf16.mxu1 %v4174_v51  ;;  %v4257_v50 = vld [vmem:[%s6006_s1 + $0x30c] ss:$16 sps:$4 sm:$0xff]   ;;  %v4252_v51 = vld [vmem:[%s6006_s1 + $0x300] ss:$16 sps:$4 sm:$0xff]  }
  0x2f   :  { %1656 = vmatpush1.bf16.msra.mxu0 %v4176_v54  ;;  %1820 = vmatpush1.bf16.msra.mxu1 %v4177_v55  ;;  %v4263_v54 = vld [vmem:[%s6006_s1 + $0x32c] ss:$16 sps:$4 sm:$0xff]   ;;  %v4258_v55 = vld [vmem:[%s6006_s1 + $0x320] ss:$16 sps:$4 sm:$0xff]  }
  0x30   :  { %1657 = vmatprep.subr.bf16.mxu0 %v4178_v56  ;;  %1821 = vmatprep.subr.bf16.mxu1 %v4180_v57  ;;  %v4261_v56 = vld [vmem:[%s6006_s1 + $0x328] ss:$16 sps:$4 sm:$0xff]   ;;  %v4266_v57 = vld [vmem:[%s6006_s1 + $0x344] ss:$16 sps:$4 sm:$0xff]  }
  0x33   :  { %1658 = vmatpush1.bf16.msra.mxu0 %v4182_v60  ;;  %1822 = vmatpush1.bf16.msra.mxu1 %v4183_v61  ;;  %v4267_v60 = vld [vmem:[%s6006_s1 + $0x348] ss:$16 sps:$4 sm:$0xff]   ;;  %v4272_v61 = vld [vmem:[%s6006_s1 + $0x364] ss:$16 sps:$4 sm:$0xff]  }
  0x34   :  { %1659 = vmatprep.subr.bf16.mxu0 %v4184_v62  ;;  %1823 = vmatprep.subr.bf16.mxu1 %v4186_v63  ;;  %v4275_v62 = vld [vmem:[%s6006_s1 + $0x36c] ss:$16 sps:$4 sm:$0xff]   ;;  %v4270_v63 = vld [vmem:[%s6006_s1 + $0x360] ss:$16 sps:$4 sm:$0xff]  }
  0x37   :  { %1660 = vmatpush1.bf16.msra.mxu0 %v4188_v0  ;;  %1824 = vmatpush1.bf16.msra.mxu1 %v4189_v1  ;;  %v4273_v0 = vld [vmem:[%s6006_s1 + $0x368] ss:$16 sps:$4 sm:$0xff]   ;;  %v4278_v1 = vld [vmem:[%s6006_s1 + $0x384] ss:$16 sps:$4 sm:$0xff]  }
  0x38   :  { %1661 = vmatprep.subr.bf16.mxu0 %v4190_v2  ;;  %1825 = vmatprep.subr.bf16.mxu1 %v4192_v3  ;;  %v4281_v2 = vld [vmem:[%s6006_s1 + $0x38c] ss:$16 sps:$4 sm:$0xff]   ;;  %v4276_v3 = vld [vmem:[%s6006_s1 + $0x380] ss:$16 sps:$4 sm:$0xff]  }
  0x3b   :  { %1662 = vmatpush1.bf16.msra.mxu0 %v4194_v5  ;;  %1826 = vmatpush1.bf16.msra.mxu1 %v4195_v6  ;;  %v4284_v5 = vld [vmem:[%s6006_s1 + $0x3a4] ss:$16 sps:$4 sm:$0xff]   ;;  %v4287_v6 = vld [vmem:[%s6006_s1 + $0x3ac] ss:$16 sps:$4 sm:$0xff]  }
  0x3c   :  { %1663 = vmatprep.subr.bf16.mxu0 %v4196_v7  ;;  %1827 = vmatprep.subr.bf16.mxu1 %v4198_v8  ;;  %v4282_v7 = vld [vmem:[%s6006_s1 + $0x3a0] ss:$16 sps:$4 sm:$0xff]   ;;  %v4285_v8 = vld [vmem:[%s6006_s1 + $0x3a8] ss:$16 sps:$4 sm:$0xff]  }
  0x3f   :  { %1664 = vmatpush1.bf16.msra.mxu0 %v4200_v10  ;;  %1828 = vmatpush1.bf16.msra.mxu1 %v4201_v11  ;;  %v4290_v10 = vld [vmem:[%s6006_s1 + $0x3c4] ss:$16 sps:$4 sm:$0xff]   ;;  %v4293_v11 = vld [vmem:[%s6006_s1 + $0x3cc] ss:$16 sps:$4 sm:$0xff]  }
  0x40   :  { %1674 = vmatprep.subr.bf16.mxu0 %v4206_v12  ;;  %1838 = vmatprep.subr.bf16.mxu1 %v4209_v13  ;;  %v4906_v12 = vld [vmem:[%s6007_s0 + $0x8] sm:$0xff]  ;;  %v4288_v13 = vld [vmem:[%s6006_s1 + $0x3c0] ss:$16 sps:$4 sm:$0xff]  }
  0x42   :  { %1666 = vmatmul.mubr.bf16.vlgmr.msra.gmra.mrb[0].mxu0 %v67_v15  ;;  %1830 = vmatmul.mubr.bf16.vlgmr.msra.gmra.mrb[0].mxu1 %v67_v15  ;;  %v4296_v15 = vld [vmem:[%s6006_s1 + $0x3e4] ss:$16 sps:$4 sm:$0xff]  }
  0x43   :  { %1675 = vmatpush1.bf16.msra.mxu0 %v4204_v16  ;;  %1839 = vmatpush1.bf16.msra.mxu1 %v4207_v17  ;;  %v4299_v16 = vld [vmem:[%s6006_s1 + $0x3ec] ss:$16 sps:$4 sm:$0xff]   ;;  %v4922_v17 = vrot.slane %v4906_v12, %v4658_v49 }
  0x44   :  { %1676 = vmatprep.subr.bf16.mxu0 %v4212_v18  ;;  %1840 = vmatprep.subr.bf16.mxu1 %v4215_v19  ;;  %v4294_v18 = vld [vmem:[%s6006_s1 + $0x3e0] ss:$16 sps:$4 sm:$0xff]   ;;  %v4297_v19 = vld [vmem:[%s6006_s1 + $0x3e8] ss:$16 sps:$4 sm:$0xff]  }
  0x45   :  { %1706 = vmatprep.mubr.bf16.mxu0 %v70_v20  ;;  %1870 = vmatprep.mubr.bf16.mxu1 %v70_v20  ;;  %v4302_v20 = vld [vmem:[%s6006_s1 + $0x404] ss:$16 sps:$4 sm:$0xff]  }
  0x47   :  { %1677 = vmatpush1.bf16.msra.mxu0 %v4210_v21  ;;  %1841 = vmatpush1.bf16.msra.mxu1 %v4213_v22  ;;  %v4305_v21 = vld [vmem:[%s6006_s1 + $0x40c] ss:$16 sps:$4 sm:$0xff]   ;;  %v57_v22 = vcombine.high %v4922_v17, %v4922_v17 }
  0x48   :  { %1678 = vmatprep.subr.bf16.mxu0 %v4218_v23  ;;  %1842 = vmatprep.subr.bf16.mxu1 %v4221_v24  ;;  %v69_v23 = vpack.c.bf16 %v4719_v9, %v4719_v9  ;;  %v4300_v24 = vld [vmem:[%s6006_s1 + $0x400] ss:$16 sps:$4 sm:$0xff]   ;;  %v4311_v9 = vld [vmem:[%s6006_s1 + $0x42c] ss:$16 sps:$4 sm:$0xff]  }
  0x4b   :  { %1679 = vmatpush1.bf16.msra.mxu0 %v4216_v25  ;;  %1843 = vmatpush1.bf16.msra.mxu1 %v4219_v26  ;;  %v4303_v25 = vld [vmem:[%s6006_s1 + $0x408] ss:$16 sps:$4 sm:$0xff]   ;;  %v4308_v26 = vld [vmem:[%s6006_s1 + $0x424] ss:$16 sps:$4 sm:$0xff]  }
  0x4c   :  { %1680 = vmatprep.subr.bf16.mxu0 %v4224_v27  ;;  %1844 = vmatprep.subr.bf16.mxu1 %v4227_v28  ;;  %v72_v27 = vpack.c.bf16 %v57_v22, %v57_v22  ;;  %v4306_v28 = vld [vmem:[%s6006_s1 + $0x420] ss:$16 sps:$4 sm:$0xff]  }
  0x4d   :  { %v4384_v22 = vld [vmem:[%s6006_s1 + $0x5c0] ss:$16 sps:$4 sm:$0xff]  }
  0x4f   :  { %1681 = vmatpush1.bf16.msra.mxu0 %v4222_v29  ;;  %1845 = vmatpush1.bf16.msra.mxu1 %v4225_v30  ;;  %v4309_v29 = vld [vmem:[%s6006_s1 + $0x428] ss:$16 sps:$4 sm:$0xff]   ;;  %v4314_v30 = vld [vmem:[%s6006_s1 + $0x444] ss:$16 sps:$4 sm:$0xff]  }
  0x50   :  { %1682 = vmatprep.subr.bf16.mxu0 %v4230_v31  ;;  %1846 = vmatprep.subr.bf16.mxu1 %v4233_v32  ;;  %v4317_v31 = vld [vmem:[%s6006_s1 + $0x44c] ss:$16 sps:$4 sm:$0xff]   ;;  %v4312_v32 = vld [vmem:[%s6006_s1 + $0x440] ss:$16 sps:$4 sm:$0xff]  }
  0x53   :  { %1683 = vmatpush1.bf16.msra.mxu0 %v4228_v33  ;;  %1847 = vmatpush1.bf16.msra.mxu1 %v4231_v34  ;;  %v4315_v33 = vld [vmem:[%s6006_s1 + $0x448] ss:$16 sps:$4 sm:$0xff]   ;;  %v4320_v34 = vld [vmem:[%s6006_s1 + $0x464] ss:$16 sps:$4 sm:$0xff]  }
  0x54   :  { %1684 = vmatprep.subr.bf16.mxu0 %v4236_v35  ;;  %1848 = vmatprep.subr.bf16.mxu1 %v4239_v36  ;;  %v4323_v35 = vld [vmem:[%s6006_s1 + $0x46c] ss:$16 sps:$4 sm:$0xff]   ;;  %v4318_v36 = vld [vmem:[%s6006_s1 + $0x460] ss:$16 sps:$4 sm:$0xff]  }
  0x57   :  { %1685 = vmatpush1.bf16.msra.mxu0 %v4234_v37  ;;  %1849 = vmatpush1.bf16.msra.mxu1 %v4237_v38  ;;  %v4321_v37 = vld [vmem:[%s6006_s1 + $0x468] ss:$16 sps:$4 sm:$0xff]   ;;  %v4326_v38 = vld [vmem:[%s6006_s1 + $0x484] ss:$16 sps:$4 sm:$0xff]  }
  0x58   :  { %1686 = vmatprep.subr.bf16.mxu0 %v4242_v39  ;;  %1850 = vmatprep.subr.bf16.mxu1 %v4245_v40  ;;  %v4329_v39 = vld [vmem:[%s6006_s1 + $0x48c] ss:$16 sps:$4 sm:$0xff]   ;;  %v4324_v40 = vld [vmem:[%s6006_s1 + $0x480] ss:$16 sps:$4 sm:$0xff]  }
  0x5b   :  { %1687 = vmatpush1.bf16.msra.mxu0 %v4240_v41  ;;  %1851 = vmatpush1.bf16.msra.mxu1 %v4243_v42  ;;  %v4327_v41 = vld [vmem:[%s6006_s1 + $0x488] ss:$16 sps:$4 sm:$0xff]   ;;  %v4332_v42 = vld [vmem:[%s6006_s1 + $0x4a4] ss:$16 sps:$4 sm:$0xff]  }
  0x5c   :  { %1688 = vmatprep.subr.bf16.mxu0 %v4248_v44  ;;  %1852 = vmatprep.subr.bf16.mxu1 %v4251_v45  ;;  %v4335_v44 = vld [vmem:[%s6006_s1 + $0x4ac] ss:$16 sps:$4 sm:$0xff]   ;;  %v4330_v45 = vld [vmem:[%s6006_s1 + $0x4a0] ss:$16 sps:$4 sm:$0xff]  }
  0x5f   :  { %1689 = vmatpush1.bf16.msra.mxu0 %v4246_v46  ;;  %1853 = vmatpush1.bf16.msra.mxu1 %v4249_v47  ;;  %v4333_v46 = vld [vmem:[%s6006_s1 + $0x4a8] ss:$16 sps:$4 sm:$0xff]   ;;  %v4338_v47 = vld [vmem:[%s6006_s1 + $0x4c4] ss:$16 sps:$4 sm:$0xff]  }
  0x60   :  { %1690 = vmatprep.subr.bf16.mxu0 %v4254_v48  ;;  %1854 = vmatprep.subr.bf16.mxu1 %v4257_v50  ;;  %v4341_v48 = vld [vmem:[%s6006_s1 + $0x4cc] ss:$16 sps:$4 sm:$0xff]   ;;  %v4336_v50 = vld [vmem:[%s6006_s1 + $0x4c0] ss:$16 sps:$4 sm:$0xff]  }
  0x63   :  { %1691 = vmatpush1.bf16.msra.mxu0 %v4252_v51  ;;  %1855 = vmatpush1.bf16.msra.mxu1 %v4255_v52  ;;  %v4339_v51 = vld [vmem:[%s6006_s1 + $0x4c8] ss:$16 sps:$4 sm:$0xff]   ;;  %v4344_v52 = vld [vmem:[%s6006_s1 + $0x4e4] ss:$16 sps:$4 sm:$0xff]  }
  0x64   :  { %1692 = vmatprep.subr.bf16.mxu0 %v4260_v53  ;;  %1856 = vmatprep.subr.bf16.mxu1 %v4263_v54  ;;  %v4347_v53 = vld [vmem:[%s6006_s1 + $0x4ec] ss:$16 sps:$4 sm:$0xff]   ;;  %v4342_v54 = vld [vmem:[%s6006_s1 + $0x4e0] ss:$16 sps:$4 sm:$0xff]  }
  0x67   :  { %1693 = vmatpush1.bf16.msra.mxu0 %v4258_v55  ;;  %1857 = vmatpush1.bf16.msra.mxu1 %v4261_v56  ;;  %v4345_v55 = vld [vmem:[%s6006_s1 + $0x4e8] ss:$16 sps:$4 sm:$0xff]   ;;  %v4350_v56 = vld [vmem:[%s6006_s1 + $0x504] ss:$16 sps:$4 sm:$0xff]  }
  0x68   :  { %1694 = vmatprep.subr.bf16.mxu0 %v4266_v57  ;;  %1858 = vmatprep.subr.bf16.mxu1 %v4269_v58  ;;  %v4353_v57 = vld [vmem:[%s6006_s1 + $0x50c] ss:$16 sps:$4 sm:$0xff]   ;;  %v4348_v58 = vld [vmem:[%s6006_s1 + $0x500] ss:$16 sps:$4 sm:$0xff]  }
  0x6b   :  { %1695 = vmatpush1.bf16.msra.mxu0 %v4264_v59  ;;  %1859 = vmatpush1.bf16.msra.mxu1 %v4267_v60  ;;  %v4351_v59 = vld [vmem:[%s6006_s1 + $0x508] ss:$16 sps:$4 sm:$0xff]   ;;  %v4356_v60 = vld [vmem:[%s6006_s1 + $0x524] ss:$16 sps:$4 sm:$0xff]  }
  0x6c   :  { %1696 = vmatprep.subr.bf16.mxu0 %v4272_v61  ;;  %1860 = vmatprep.subr.bf16.mxu1 %v4275_v62  ;;  %v4359_v61 = vld [vmem:[%s6006_s1 + $0x52c] ss:$16 sps:$4 sm:$0xff]   ;;  %v4354_v62 = vld [vmem:[%s6006_s1 + $0x520] ss:$16 sps:$4 sm:$0xff]  }
  0x6f   :  { %1697 = vmatpush1.bf16.msra.mxu0 %v4270_v63  ;;  %1861 = vmatpush1.bf16.msra.mxu1 %v4273_v0  ;;  %v4357_v63 = vld [vmem:[%s6006_s1 + $0x528] ss:$16 sps:$4 sm:$0xff]   ;;  %v4362_v0 = vld [vmem:[%s6006_s1 + $0x544] ss:$16 sps:$4 sm:$0xff]  }
  0x70   :  { %1698 = vmatprep.subr.bf16.mxu0 %v4278_v1  ;;  %1862 = vmatprep.subr.bf16.mxu1 %v4281_v2  ;;  %v4365_v1 = vld [vmem:[%s6006_s1 + $0x54c] ss:$16 sps:$4 sm:$0xff]   ;;  %v4360_v2 = vld [vmem:[%s6006_s1 + $0x540] ss:$16 sps:$4 sm:$0xff]  }
  0x73   :  { %1699 = vmatpush1.bf16.msra.mxu0 %v4276_v3  ;;  %1863 = vmatpush1.bf16.msra.mxu1 %v4279_v4  ;;  %v4363_v3 = vld [vmem:[%s6006_s1 + $0x548] ss:$16 sps:$4 sm:$0xff]   ;;  %v4368_v4 = vld [vmem:[%s6006_s1 + $0x564] ss:$16 sps:$4 sm:$0xff]  }
  0x74   :  { %1700 = vmatprep.subr.bf16.mxu0 %v4284_v5  ;;  %1864 = vmatprep.subr.bf16.mxu1 %v4287_v6  ;;  %v4371_v5 = vld [vmem:[%s6006_s1 + $0x56c] ss:$16 sps:$4 sm:$0xff]   ;;  %v4366_v6 = vld [vmem:[%s6006_s1 + $0x560] ss:$16 sps:$4 sm:$0xff]  }
  0x77   :  { %1701 = vmatpush1.bf16.msra.mxu0 %v4282_v7  ;;  %1865 = vmatpush1.bf16.msra.mxu1 %v4285_v8  ;;  %v4369_v7 = vld [vmem:[%s6006_s1 + $0x568] ss:$16 sps:$4 sm:$0xff]   ;;  %v4374_v8 = vld [vmem:[%s6006_s1 + $0x584] ss:$16 sps:$4 sm:$0xff]  }
  0x78   :  { %1702 = vmatprep.subr.bf16.mxu0 %v4290_v10  ;;  %1866 = vmatprep.subr.bf16.mxu1 %v4293_v11  ;;  %v4377_v10 = vld [vmem:[%s6006_s1 + $0x58c] ss:$16 sps:$4 sm:$0xff]   ;;  %v4372_v11 = vld [vmem:[%s6006_s1 + $0x580] ss:$16 sps:$4 sm:$0xff]  }
  0x7b   :  { %1703 = vmatpush1.bf16.msra.mxu0 %v4288_v13  ;;  %1867 = vmatpush1.bf16.msra.mxu1 %v4291_v14  ;;  %v4375_v13 = vld [vmem:[%s6006_s1 + $0x588] ss:$16 sps:$4 sm:$0xff]   ;;  %v4380_v14 = vld [vmem:[%s6006_s1 + $0x5a4] ss:$16 sps:$4 sm:$0xff]  }
  0x7c   :  { %1704 = vmatprep.subr.bf16.mxu0 %v4296_v15  ;;  %1868 = vmatprep.subr.bf16.mxu1 %v4299_v16  ;;  %v4383_v15 = vld [vmem:[%s6006_s1 + $0x5ac] ss:$16 sps:$4 sm:$0xff]   ;;  %v4378_v16 = vld [vmem:[%s6006_s1 + $0x5a0] ss:$16 sps:$4 sm:$0xff]  }
  0x7f   :  { %1705 = vmatpush1.bf16.msra.mxu0 %v4294_v18  ;;  %1869 = vmatpush1.bf16.msra.mxu1 %v4297_v19  ;;  %v4381_v18 = vld [vmem:[%s6006_s1 + $0x5a8] ss:$16 sps:$4 sm:$0xff]   ;;  %v4386_v19 = vld [vmem:[%s6006_s1 + $0x5c4] ss:$16 sps:$4 sm:$0xff]  }
  0x80   :  { %1715 = vmatprep.subr.bf16.mxu0 %v4302_v20  ;;  %1879 = vmatprep.subr.bf16.mxu1 %v4305_v21  ;;  %v4389_v20 = vld [vmem:[%s6006_s1 + $0x5cc] ss:$16 sps:$4 sm:$0xff]   ;;  %v42_v21 = vcombine.high %v4906_v12, %v4906_v12 }
  0x81   :  { %v4395_v12 = vld [vmem:[%s6006_s1 + $0x5ec] ss:$16 sps:$4 sm:$0xff]  }
  0x82   :  { %1707 = vmatmul.mubr.bf16.vlgmr.msra.gmra.mrb[0].mxu0 %v69_v23  ;;  %1871 = vmatmul.mubr.bf16.vlgmr.msra.gmra.mrb[0].mxu1 %v69_v23  ;;  %v4387_v23 = vld [vmem:[%s6006_s1 + $0x5c8] ss:$16 sps:$4 sm:$0xff]  }
  0x83   :  { %1716 = vmatpush1.bf16.msra.mxu0 %v4300_v24  ;;  %1880 = vmatpush1.bf16.msra.mxu1 %v4303_v25  ;;  %v4392_v24 = vld [vmem:[%s6006_s1 + $0x5e4] ss:$16 sps:$4 sm:$0xff]   ;;  %v5123_v25 = vrot.slane %v42_v21, %v4658_v49  ;;  %v4471_v21 = vld [vmem:[%s6006_s1 + $0x788] ss:$16 sps:$4 sm:$0xff]  }
  0x84   :  { %1717 = vmatprep.subr.bf16.mxu0 %v4308_v26  ;;  %1881 = vmatprep.subr.bf16.mxu1 %v4311_v9  ;;  %v4390_v26 = vld [vmem:[%s6006_s1 + $0x5e0] ss:$16 sps:$4 sm:$0xff]   ;;  %v4393_v9 = vld [vmem:[%s6006_s1 + $0x5e8] ss:$16 sps:$4 sm:$0xff]  }
  0x85   :  { %1747 = vmatprep.mubr.bf16.mxu0 %v72_v27  ;;  %1911 = vmatprep.mubr.bf16.mxu1 %v72_v27  ;;  %v4398_v27 = vld [vmem:[%s6006_s1 + $0x604] ss:$16 sps:$4 sm:$0xff]  }
  0x87   :  { %1718 = vmatpush1.bf16.msra.mxu0 %v4306_v28  ;;  %1882 = vmatpush1.bf16.msra.mxu1 %v4309_v29  ;;  %v4401_v28 = vld [vmem:[%s6006_s1 + $0x60c] ss:$16 sps:$4 sm:$0xff]   ;;  %v58_v29 = vcombine.high %v5123_v25, %v5123_v25 }
  0x88   :  { %1719 = vmatprep.subr.bf16.mxu0 %v4314_v30  ;;  %1883 = vmatprep.subr.bf16.mxu1 %v4317_v31  ;;  %v71_v30 = vpack.c.bf16 %v4922_v17, %v4922_v17  ;;  %v4396_v31 = vld [vmem:[%s6006_s1 + $0x600] ss:$16 sps:$4 sm:$0xff]   ;;  %v4407_v17 = vld [vmem:[%s6006_s1 + $0x62c] ss:$16 sps:$4 sm:$0xff]  }
  0x8b   :  { %1720 = vmatpush1.bf16.msra.mxu0 %v4312_v32  ;;  %1884 = vmatpush1.bf16.msra.mxu1 %v4315_v33  ;;  %v4399_v32 = vld [vmem:[%s6006_s1 + $0x608] ss:$16 sps:$4 sm:$0xff]   ;;  %v4404_v33 = vld [vmem:[%s6006_s1 + $0x624] ss:$16 sps:$4 sm:$0xff]  }
  0x8c   :  { %1721 = vmatprep.subr.bf16.mxu0 %v4320_v34  ;;  %1885 = vmatprep.subr.bf16.mxu1 %v4323_v35  ;;  %v74_v34 = vpack.c.bf16 %v58_v29, %v58_v29  ;;  %v4402_v35 = vld [vmem:[%s6006_s1 + $0x620] ss:$16 sps:$4 sm:$0xff]   ;;  %v4488_v29 = vld [vmem:[%s6006_s1 + $0x7e4] ss:$16 sps:$4 sm:$0xff]  }
  0x8f   :  { %1722 = vmatpush1.bf16.msra.mxu0 %v4318_v36  ;;  %1886 = vmatpush1.bf16.msra.mxu1 %v4321_v37  ;;  %v4405_v36 = vld [vmem:[%s6006_s1 + $0x628] ss:$16 sps:$4 sm:$0xff]   ;;  %v4410_v37 = vld [vmem:[%s6006_s1 + $0x644] ss:$16 sps:$4 sm:$0xff]  }
  0x90   :  { %1723 = vmatprep.subr.bf16.mxu0 %v4326_v38  ;;  %1887 = vmatprep.subr.bf16.mxu1 %v4329_v39  ;;  %v4413_v38 = vld [vmem:[%s6006_s1 + $0x64c] ss:$16 sps:$4 sm:$0xff]   ;;  %v4408_v39 = vld [vmem:[%s6006_s1 + $0x640] ss:$16 sps:$4 sm:$0xff]  }
  0x93   :  { %1724 = vmatpush1.bf16.msra.mxu0 %v4324_v40  ;;  %1888 = vmatpush1.bf16.msra.mxu1 %v4327_v41  ;;  %v4411_v40 = vld [vmem:[%s6006_s1 + $0x648] ss:$16 sps:$4 sm:$0xff]   ;;  %v4416_v41 = vld [vmem:[%s6006_s1 + $0x664] ss:$16 sps:$4 sm:$0xff]  }
  0x94   :  { %1725 = vmatprep.subr.bf16.mxu0 %v4332_v42  ;;  %1889 = vmatprep.subr.bf16.mxu1 %v4335_v44  ;;  %v4419_v42 = vld [vmem:[%s6006_s1 + $0x66c] ss:$16 sps:$4 sm:$0xff]   ;;  %v4414_v44 = vld [vmem:[%s6006_s1 + $0x660] ss:$16 sps:$4 sm:$0xff]  }
  0x97   :  { %1726 = vmatpush1.bf16.msra.mxu0 %v4330_v45  ;;  %1890 = vmatpush1.bf16.msra.mxu1 %v4333_v46  ;;  %v4417_v45 = vld [vmem:[%s6006_s1 + $0x668] ss:$16 sps:$4 sm:$0xff]   ;;  %v4422_v46 = vld [vmem:[%s6006_s1 + $0x684] ss:$16 sps:$4 sm:$0xff]  }
  0x98   :  { %1727 = vmatprep.subr.bf16.mxu0 %v4338_v47  ;;  %1891 = vmatprep.subr.bf16.mxu1 %v4341_v48  ;;  %v4425_v47 = vld [vmem:[%s6006_s1 + $0x68c] ss:$16 sps:$4 sm:$0xff]   ;;  %v4420_v48 = vld [vmem:[%s6006_s1 + $0x680] ss:$16 sps:$4 sm:$0xff]  }
  0x9b   :  { %1728 = vmatpush1.bf16.msra.mxu0 %v4336_v50  ;;  %1892 = vmatpush1.bf16.msra.mxu1 %v4339_v51  ;;  %v4423_v50 = vld [vmem:[%s6006_s1 + $0x688] ss:$16 sps:$4 sm:$0xff]   ;;  %v4428_v51 = vld [vmem:[%s6006_s1 + $0x6a4] ss:$16 sps:$4 sm:$0xff]  }
  0x9c   :  { %1729 = vmatprep.subr.bf16.mxu0 %v4344_v52  ;;  %1893 = vmatprep.subr.bf16.mxu1 %v4347_v53  ;;  %v4431_v52 = vld [vmem:[%s6006_s1 + $0x6ac] ss:$16 sps:$4 sm:$0xff]   ;;  %v4426_v53 = vld [vmem:[%s6006_s1 + $0x6a0] ss:$16 sps:$4 sm:$0xff]  }
  0x9f   :  { %1730 = vmatpush1.bf16.msra.mxu0 %v4342_v54  ;;  %1894 = vmatpush1.bf16.msra.mxu1 %v4345_v55  ;;  %v4429_v54 = vld [vmem:[%s6006_s1 + $0x6a8] ss:$16 sps:$4 sm:$0xff]   ;;  %v4434_v55 = vld [vmem:[%s6006_s1 + $0x6c4] ss:$16 sps:$4 sm:$0xff]  }
  0xa0   :  { %1731 = vmatprep.subr.bf16.mxu0 %v4350_v56  ;;  %1895 = vmatprep.subr.bf16.mxu1 %v4353_v57  ;;  %v4437_v56 = vld [vmem:[%s6006_s1 + $0x6cc] ss:$16 sps:$4 sm:$0xff]   ;;  %v4432_v57 = vld [vmem:[%s6006_s1 + $0x6c0] ss:$16 sps:$4 sm:$0xff]  }
  0xa3   :  { %1732 = vmatpush1.bf16.msra.mxu0 %v4348_v58  ;;  %1896 = vmatpush1.bf16.msra.mxu1 %v4351_v59  ;;  %v4435_v58 = vld [vmem:[%s6006_s1 + $0x6c8] ss:$16 sps:$4 sm:$0xff]   ;;  %v4440_v59 = vld [vmem:[%s6006_s1 + $0x6e4] ss:$16 sps:$4 sm:$0xff]  }
  0xa4   :  { %1733 = vmatprep.subr.bf16.mxu0 %v4356_v60  ;;  %1897 = vmatprep.subr.bf16.mxu1 %v4359_v61  ;;  %v4443_v60 = vld [vmem:[%s6006_s1 + $0x6ec] ss:$16 sps:$4 sm:$0xff]   ;;  %v4438_v61 = vld [vmem:[%s6006_s1 + $0x6e0] ss:$16 sps:$4 sm:$0xff]  }
  0xa7   :  { %1734 = vmatpush1.bf16.msra.mxu0 %v4354_v62  ;;  %1898 = vmatpush1.bf16.msra.mxu1 %v4357_v63  ;;  %v4441_v62 = vld [vmem:[%s6006_s1 + $0x6e8] ss:$16 sps:$4 sm:$0xff]   ;;  %v4446_v63 = vld [vmem:[%s6006_s1 + $0x704] ss:$16 sps:$4 sm:$0xff]  }
  0xa8   :  { %1735 = vmatprep.subr.bf16.mxu0 %v4362_v0  ;;  %1899 = vmatprep.subr.bf16.mxu1 %v4365_v1  ;;  %v4449_v0 = vld [vmem:[%s6006_s1 + $0x70c] ss:$16 sps:$4 sm:$0xff]   ;;  %v4444_v1 = vld [vmem:[%s6006_s1 + $0x700] ss:$16 sps:$4 sm:$0xff]  }
  0xab   :  { %1736 = vmatpush1.bf16.msra.mxu0 %v4360_v2  ;;  %1900 = vmatpush1.bf16.msra.mxu1 %v4363_v3  ;;  %v4447_v2 = vld [vmem:[%s6006_s1 + $0x708] ss:$16 sps:$4 sm:$0xff]   ;;  %v4452_v3 = vld [vmem:[%s6006_s1 + $0x724] ss:$16 sps:$4 sm:$0xff]  }
  0xac   :  { %1737 = vmatprep.subr.bf16.mxu0 %v4368_v4  ;;  %1901 = vmatprep.subr.bf16.mxu1 %v4371_v5  ;;  %v4455_v4 = vld [vmem:[%s6006_s1 + $0x72c] ss:$16 sps:$4 sm:$0xff]   ;;  %v4450_v5 = vld [vmem:[%s6006_s1 + $0x720] ss:$16 sps:$4 sm:$0xff]  }
  0xaf   :  { %1738 = vmatpush1.bf16.msra.mxu0 %v4366_v6  ;;  %1902 = vmatpush1.bf16.msra.mxu1 %v4369_v7  ;;  %v4453_v6 = vld [vmem:[%s6006_s1 + $0x728] ss:$16 sps:$4 sm:$0xff]   ;;  %v4458_v7 = vld [vmem:[%s6006_s1 + $0x744] ss:$16 sps:$4 sm:$0xff]  }
  0xb0   :  { %1739 = vmatprep.subr.bf16.mxu0 %v4374_v8  ;;  %1903 = vmatprep.subr.bf16.mxu1 %v4377_v10  ;;  %v4461_v8 = vld [vmem:[%s6006_s1 + $0x74c] ss:$16 sps:$4 sm:$0xff]   ;;  %v4456_v10 = vld [vmem:[%s6006_s1 + $0x740] ss:$16 sps:$4 sm:$0xff]  }
  0xb3   :  { %1740 = vmatpush1.bf16.msra.mxu0 %v4372_v11  ;;  %1904 = vmatpush1.bf16.msra.mxu1 %v4375_v13  ;;  %v4459_v11 = vld [vmem:[%s6006_s1 + $0x748] ss:$16 sps:$4 sm:$0xff]   ;;  %v4464_v13 = vld [vmem:[%s6006_s1 + $0x764] ss:$16 sps:$4 sm:$0xff]  }
  0xb4   :  { %1741 = vmatprep.subr.bf16.mxu0 %v4380_v14  ;;  %1905 = vmatprep.subr.bf16.mxu1 %v4383_v15  ;;  %v4467_v14 = vld [vmem:[%s6006_s1 + $0x76c] ss:$16 sps:$4 sm:$0xff]   ;;  %v4462_v15 = vld [vmem:[%s6006_s1 + $0x760] ss:$16 sps:$4 sm:$0xff]  }
  0xb7   :  { %1742 = vmatpush1.bf16.msra.mxu0 %v4378_v16  ;;  %1906 = vmatpush1.bf16.msra.mxu1 %v4381_v18  ;;  %v4465_v16 = vld [vmem:[%s6006_s1 + $0x768] ss:$16 sps:$4 sm:$0xff]   ;;  %v4470_v18 = vld [vmem:[%s6006_s1 + $0x784] ss:$16 sps:$4 sm:$0xff]  }
  0xb8   :  { %1743 = vmatprep.subr.bf16.mxu0 %v4386_v19  ;;  %1907 = vmatprep.subr.bf16.mxu1 %v4389_v20  ;;  %v4473_v19 = vld [vmem:[%s6006_s1 + $0x78c] ss:$16 sps:$4 sm:$0xff]   ;;  %v4468_v20 = vld [vmem:[%s6006_s1 + $0x780] ss:$16 sps:$4 sm:$0xff]  }
  0xbb   :  { %1744 = vmatpush1.bf16.msra.mxu0 %v4384_v22  ;;  %1908 = vmatpush1.bf16.msra.mxu1 %v4387_v23  ;;  %v4476_v22 = vld [vmem:[%s6006_s1 + $0x7a4] ss:$16 sps:$4 sm:$0xff]   ;;  %v4479_v23 = vld [vmem:[%s6006_s1 + $0x7ac] ss:$16 sps:$4 sm:$0xff]  }
  0xbc   :  { %1745 = vmatprep.subr.bf16.mxu0 %v4392_v24  ;;  %1909 = vmatprep.subr.bf16.mxu1 %v4395_v12  ;;  %v4474_v24 = vld [vmem:[%s6006_s1 + $0x7a0] ss:$16 sps:$4 sm:$0xff]   ;;  %v4477_v12 = vld [vmem:[%s6006_s1 + $0x7a8] ss:$16 sps:$4 sm:$0xff]  }
  0xbf   :  { %1746 = vmatpush1.bf16.msra.mxu0 %v4390_v26  ;;  %1910 = vmatpush1.bf16.msra.mxu1 %v4393_v9  ;;  %v4482_v26 = vld [vmem:[%s6006_s1 + $0x7c4] ss:$16 sps:$4 sm:$0xff]   ;;  %v4485_v9 = vld [vmem:[%s6006_s1 + $0x7cc] ss:$16 sps:$4 sm:$0xff]  }
  0xc0   :  { %1756 = vmatprep.subr.bf16.mxu0 %v4398_v27  ;;  %1920 = vmatprep.subr.bf16.mxu1 %v4401_v28  ;;  %v4480_v27 = vld [vmem:[%s6006_s1 + $0x7c0] ss:$16 sps:$4 sm:$0xff]   ;;  %v4483_v28 = vld [vmem:[%s6006_s1 + $0x7c8] ss:$16 sps:$4 sm:$0xff]  }
  0xc2   :  { %1748 = vmatmul.mubr.bf16.vlgmr.msra.gmra.mrb[0].mxu0 %v71_v30  ;;  %1912 = vmatmul.mubr.bf16.vlgmr.msra.gmra.mrb[0].mxu1 %v71_v30  ;;  %v4491_v30 = vld [vmem:[%s6006_s1 + $0x7ec] ss:$16 sps:$4 sm:$0xff]  }
  0xc3   :  { %1757 = vmatpush1.bf16.msra.mxu0 %v4396_v31  ;;  %1921 = vmatpush1.bf16.msra.mxu1 %v4399_v32  ;;  %v1969_v31 = vld [vmem:[%s6008_s3] sm:$0xff] }
  0xc4   :  { %1758 = vmatprep.subr.bf16.mxu0 %v4404_v33  ;;  %1922 = vmatprep.subr.bf16.mxu1 %v4407_v17  ;;  %v1973_v32 = vld [vmem:[%s6008_s3 + $0x20] sm:$0xff]  ;;  %v1970_v33 = vld [vmem:[%s6008_s3 + $0x8] sm:$0xff] }
  0xc5   :  { %1788 = vmatprep.mubr.bf16.mxu0 %v74_v34  ;;  %1952 = vmatprep.mubr.bf16.mxu1 %v74_v34  ;;  %v1974_v17 = vld [vmem:[%s6008_s3 + $0x28] sm:$0xff]  ;;  %v4486_v34 = vld [vmem:[%s6006_s1 + $0x7e0] ss:$16 sps:$4 sm:$0xff]  }
  0xc7   :  { %1759 = vmatpush1.bf16.msra.mxu0 %v4402_v35  ;;  %1923 = vmatpush1.bf16.msra.mxu1 %v4405_v36  ;;  %v4489_v35 = vld [vmem:[%s6006_s1 + $0x7e8] ss:$16 sps:$4 sm:$0xff]   ;;  %v3850_v36 = vcombine.high %v1969_v31, %v1973_v32 }
  0xc8   :  { %1760 = vmatprep.subr.bf16.mxu0 %v4410_v37  ;;  %1924 = vmatprep.subr.bf16.mxu1 %v4413_v38  ;;  %v3852_v37 = vcombine.high %v1970_v33, %v1974_v17  ;;  %v1977_v38 = vld [vmem:[%s6008_s3 + $0x40] sm:$0xff] }
  0xcb   :  { %1761 = vmatpush1.bf16.msra.mxu0 %v4408_v39  ;;  %1925 = vmatpush1.bf16.msra.mxu1 %v4411_v40  ;;  %v1981_v39 = vld [vmem:[%s6008_s3 + $0x60] sm:$0xff]  ;;  %v1978_v40 = vld [vmem:[%s6008_s3 + $0x48] sm:$0xff] }
  0xcc   :  { %1762 = vmatprep.subr.bf16.mxu0 %v4416_v41  ;;  %1926 = vmatprep.subr.bf16.mxu1 %v4419_v42  ;;  %v1982_v41 = vld [vmem:[%s6008_s3 + $0x68] sm:$0xff]  ;;  %v73_v42 = vpack.c.bf16 %v5123_v25, %v5123_v25 }
  0xcd   :  { %v1986_v25 = vld [vmem:[%s6008_s3 + $0x88] sm:$0xff] }
  0xcf   :  { %1763 = vmatpush1.bf16.msra.mxu0 %v4414_v44  ;;  %1927 = vmatpush1.bf16.msra.mxu1 %v4417_v45  ;;  %v3849_v44 = vcombine.low %v1969_v31, %v1973_v32  ;;  %v3851_v45 = vcombine.low %v1970_v33, %v1974_v17  ;;  %v2033_v17 = vld [vmem:[%s6008_s3 + $0x200] sm:$0xff] }
  0xd0   :  { %1764 = vmatprep.subr.bf16.mxu0 %v4422_v46  ;;  %1928 = vmatprep.subr.bf16.mxu1 %v4425_v47  ;;  %v3858_v46 = vcombine.high %v1977_v38, %v1981_v39  ;;  %v3860_v47 = vcombine.high %v1978_v40, %v1982_v41 }
  0xd3   :  { %1765 = vmatpush1.bf16.msra.mxu0 %v4420_v48  ;;  %1929 = vmatpush1.bf16.msra.mxu1 %v4423_v50  ;;  %v1985_v48 = vld [vmem:[%s6008_s3 + $0x80] sm:$0xff] }
  0xd4   :  { %1766 = vmatprep.subr.bf16.mxu0 %v4428_v51  ;;  %1930 = vmatprep.subr.bf16.mxu1 %v4431_v52  ;;  %v1989_v50 = vld [vmem:[%s6008_s3 + $0xa0] sm:$0xff]  ;;  %v1990_v51 = vld [vmem:[%s6008_s3 + $0xa8] sm:$0xff]  ;;  %v3857_v52 = vcombine.low %v1977_v38, %v1981_v39 }
  0xd7   :  { %1767 = vmatpush1.bf16.msra.mxu0 %v4426_v53  ;;  %1931 = vmatpush1.bf16.msra.mxu1 %v4429_v54  ;;  %v3859_v53 = vcombine.low %v1978_v40, %v1982_v41  ;;  %v3866_v54 = vcombine.high %v1985_v48, %v1989_v50  ;;  %v2041_v41 = vld [vmem:[%s6008_s3 + $0x240] sm:$0xff] }
  0xd8   :  { %1768 = vmatprep.subr.bf16.mxu0 %v4434_v55  ;;  %1932 = vmatprep.subr.bf16.mxu1 %v4437_v56  ;;  %v3868_v55 = vcombine.high %v1986_v25, %v1990_v51  ;;  %v1993_v56 = vld [vmem:[%s6008_s3 + $0xc0] sm:$0xff] }
  0xdb   :  { %1769 = vmatpush1.bf16.msra.mxu0 %v4432_v57  ;;  %1933 = vmatpush1.bf16.msra.mxu1 %v4435_v58  ;;  %v1997_v57 = vld [vmem:[%s6008_s3 + $0xe0] sm:$0xff]  ;;  %v1994_v58 = vld [vmem:[%s6008_s3 + $0xc8] sm:$0xff] }
  0xdc   :  { %1770 = vmatprep.subr.bf16.mxu0 %v4440_v59  ;;  %1934 = vmatprep.subr.bf16.mxu1 %v4443_v60  ;;  %v1998_v59 = vld [vmem:[%s6008_s3 + $0xe8] sm:$0xff]  ;;  %v3865_v60 = vcombine.low %v1985_v48, %v1989_v50 }
  0xdf   :  { %1771 = vmatpush1.bf16.msra.mxu0 %v4438_v61  ;;  %1935 = vmatpush1.bf16.msra.mxu1 %v4441_v62  ;;  %v3867_v61 = vcombine.low %v1986_v25, %v1990_v51  ;;  %v3874_v62 = vcombine.high %v1993_v56, %v1997_v57  ;;  %v2049_v25 = vld [vmem:[%s6008_s3 + $0x280] sm:$0xff] }
  0xe0   :  { %1772 = vmatprep.subr.bf16.mxu0 %v4446_v63  ;;  %1936 = vmatprep.subr.bf16.mxu1 %v4449_v0  ;;  %v3876_v63 = vcombine.high %v1994_v58, %v1998_v59  ;;  %v2001_v0 = vld [vmem:[%s6008_s3 + $0x100] sm:$0xff] }
  0xe1   :  { %v2053_v51 = vld [vmem:[%s6008_s3 + $0x2a0] sm:$0xff] }
  0xe3   :  { %1773 = vmatpush1.bf16.msra.mxu0 %v4444_v1  ;;  %1937 = vmatpush1.bf16.msra.mxu1 %v4447_v2  ;;  %v2005_v1 = vld [vmem:[%s6008_s3 + $0x120] sm:$0xff]  ;;  %v2002_v2 = vld [vmem:[%s6008_s3 + $0x108] sm:$0xff] }
  0xe4   :  { %1774 = vmatprep.subr.bf16.mxu0 %v4452_v3  ;;  %1938 = vmatprep.subr.bf16.mxu1 %v4455_v4  ;;  %v2006_v3 = vld [vmem:[%s6008_s3 + $0x128] sm:$0xff]  ;;  %v3873_v4 = vcombine.low %v1993_v56, %v1997_v57  ;;  %v3930_v56 = vcombine.high %v2049_v25, %v2053_v51 }
  0xe7   :  { %1775 = vmatpush1.bf16.msra.mxu0 %v4450_v5  ;;  %1939 = vmatpush1.bf16.msra.mxu1 %v4453_v6  ;;  %v3875_v5 = vcombine.low %v1994_v58, %v1998_v59  ;;  %v3882_v6 = vcombine.high %v2001_v0, %v2005_v1  ;;  %v2057_v58 = vld [vmem:[%s6008_s3 + $0x2c0] sm:$0xff] }
  0xe8   :  { %1776 = vmatprep.subr.bf16.mxu0 %v4458_v7  ;;  %1940 = vmatprep.subr.bf16.mxu1 %v4461_v8  ;;  %v3884_v7 = vcombine.high %v2002_v2, %v2006_v3  ;;  %v2009_v8 = vld [vmem:[%s6008_s3 + $0x140] sm:$0xff] }
  0xe9   :  { %v2061_v59 = vld [vmem:[%s6008_s3 + $0x2e0] sm:$0xff] }
  0xeb   :  { %1777 = vmatpush1.bf16.msra.mxu0 %v4456_v10  ;;  %1941 = vmatpush1.bf16.msra.mxu1 %v4459_v11  ;;  %v2013_v10 = vld [vmem:[%s6008_s3 + $0x160] sm:$0xff]  ;;  %v2010_v11 = vld [vmem:[%s6008_s3 + $0x148] sm:$0xff] }
  0xec   :  { %1778 = vmatprep.subr.bf16.mxu0 %v4464_v13  ;;  %1942 = vmatprep.subr.bf16.mxu1 %v4467_v14  ;;  %v2014_v13 = vld [vmem:[%s6008_s3 + $0x168] sm:$0xff]  ;;  %v3881_v14 = vcombine.low %v2001_v0, %v2005_v1  ;;  %v3938_v0 = vcombine.high %v2057_v58, %v2061_v59 }
  0xef   :  { %1779 = vmatpush1.bf16.msra.mxu0 %v4462_v15  ;;  %1943 = vmatpush1.bf16.msra.mxu1 %v4465_v16  ;;  %v3883_v15 = vcombine.low %v2002_v2, %v2006_v3  ;;  %v3890_v16 = vcombine.high %v2009_v8, %v2013_v10  ;;  %v2065_v2 = vld [vmem:[%s6008_s3 + $0x300] sm:$0xff] }
  0xf0   :  { %1780 = vmatprep.subr.bf16.mxu0 %v4470_v18  ;;  %1944 = vmatprep.subr.bf16.mxu1 %v4473_v19  ;;  %v3892_v18 = vcombine.high %v2010_v11, %v2014_v13  ;;  %v2017_v19 = vld [vmem:[%s6008_s3 + $0x180] sm:$0xff] }
  0xf1   :  { %v2069_v3 = vld [vmem:[%s6008_s3 + $0x320] sm:$0xff] }
  0xf3   :  { %1781 = vmatpush1.bf16.msra.mxu0 %v4468_v20  ;;  %1945 = vmatpush1.bf16.msra.mxu1 %v4471_v21  ;;  %v2021_v20 = vld [vmem:[%s6008_s3 + $0x1a0] sm:$0xff]  ;;  %v2018_v21 = vld [vmem:[%s6008_s3 + $0x188] sm:$0xff] }
  0xf4   :  { %1782 = vmatprep.subr.bf16.mxu0 %v4476_v22  ;;  %1946 = vmatprep.subr.bf16.mxu1 %v4479_v23  ;;  %v2022_v22 = vld [vmem:[%s6008_s3 + $0x1a8] sm:$0xff]  ;;  %v3889_v23 = vcombine.low %v2009_v8, %v2013_v10  ;;  %v3946_v8 = vcombine.high %v2065_v2, %v2069_v3 }
  0xf5   :  { %v3899_v31 = vcombine.low %v2018_v21, %v2022_v22 }
  0xf7   :  { %1783 = vmatpush1.bf16.msra.mxu0 %v4474_v24  ;;  %1947 = vmatpush1.bf16.msra.mxu1 %v4477_v12  ;;  %v3891_v24 = vcombine.low %v2010_v11, %v2014_v13  ;;  %v3898_v12 = vcombine.high %v2017_v19, %v2021_v20  ;;  %v2073_v11 = vld [vmem:[%s6008_s3 + $0x340] sm:$0xff] }
  0xf8   :  { %1784 = vmatprep.subr.bf16.mxu0 %v4482_v26  ;;  %1948 = vmatprep.subr.bf16.mxu1 %v4485_v9  ;;  %v3900_v26 = vcombine.high %v2018_v21, %v2022_v22  ;;  %v2025_v9 = vld [vmem:[%s6008_s3 + $0x1c0] sm:$0xff] }
  0xf9   :  { %v2077_v13 = vld [vmem:[%s6008_s3 + $0x360] sm:$0xff] }
  0xfa   :  { %v3953_v21 = vcombine.low %v2073_v11, %v2077_v13 }
  0xfb   :  { %1785 = vmatpush1.bf16.msra.mxu0 %v4480_v27  ;;  %1949 = vmatpush1.bf16.msra.mxu1 %v4483_v28  ;;  %v2029_v27 = vld [vmem:[%s6008_s3 + $0x1e0] sm:$0xff]  ;;  %v2026_v28 = vld [vmem:[%s6008_s3 + $0x1c8] sm:$0xff] }
  0xfc   :  { %1786 = vmatprep.subr.bf16.mxu0 %v4488_v29  ;;  %1950 = vmatprep.subr.bf16.mxu1 %v4491_v30  ;;  %v2030_v29 = vld [vmem:[%s6008_s3 + $0x1e8] sm:$0xff]  ;;  %v3897_v30 = vcombine.low %v2017_v19, %v2021_v20  ;;  %v3906_v32 = vcombine.high %v2025_v9, %v2029_v27  ;;  %v3954_v19 = vcombine.high %v2073_v11, %v2077_v13 }
  0xfd   :  { %v3908_v33 = vcombine.high %v2026_v28, %v2030_v29  ;;  %v3907_v38 = vcombine.low %v2026_v28, %v2030_v29 }
  0xff   :  { %1787 = vmatpush1.bf16.msra.mxu0 %v4486_v34  ;;  %1951 = vmatpush1.bf16.msra.mxu1 %v4489_v35  ;;  %v2037_v34 = vld [vmem:[%s6008_s3 + $0x220] sm:$0xff]  ;;  %v2034_v35 = vld [vmem:[%s6008_s3 + $0x208] sm:$0xff] }
 0x100   :  { %3215 = vmatprep.subr.bf16.mxu0 %v3850_v36  ;;  %3297 = vmatprep.subr.bf16.mxu1 %v3852_v37  ;;  %v2038_v36 = vld [vmem:[%s6008_s3 + $0x228] sm:$0xff]  ;;  %v3905_v37 = vcombine.low %v2025_v9, %v2029_v27  ;;  %v3914_v39 = vcombine.high %v2033_v17, %v2037_v34 }
 0x101   :  { %v3916_v40 = vcombine.high %v2034_v35, %v2038_v36  ;;  %v2086_v9 = vld [vmem:[%s6008_s3 + $0x3a8] sm:$0xff] }
 0x102   :  { %1789 = vmatmul.mubr.bf16.vlgmr.msra.gmra.mrb[0].mxu0 %v73_v42  ;;  %1953 = vmatmul.mubr.bf16.vlgmr.msra.gmra.mrb[0].mxu1 %v73_v42  ;;  %v2045_v42 = vld [vmem:[%s6008_s3 + $0x260] sm:$0xff] }
 0x103   :  { %3216 = vmatpush1.bf16.msra.mxu0 %v3849_v44  ;;  %3298 = vmatpush1.bf16.msra.mxu1 %v3851_v45  ;;  %v2042_v44 = vld [vmem:[%s6008_s3 + $0x248] sm:$0xff]  ;;  %v3922_v48 = vcombine.high %v2041_v41, %v2045_v42 }
 0x104   :  { %3217 = vmatprep.subr.bf16.mxu0 %v3858_v46  ;;  %3299 = vmatprep.subr.bf16.mxu1 %v3860_v47  ;;  %v2046_v45 = vld [vmem:[%s6008_s3 + $0x268] sm:$0xff]  ;;  %v3913_v46 = vcombine.low %v2033_v17, %v2037_v34  ;;  %v3915_v47 = vcombine.low %v2034_v35, %v2038_v36 }
 0x105   :  { %v3924_v50 = vcombine.high %v2042_v44, %v2046_v45  ;;  %v2094_v17 = vld [vmem:[%s6008_s3 + $0x3e8] sm:$0xff] }
 0x107   :  { %3218 = vmatpush1.bf16.msra.mxu0 %v3857_v52  ;;  %3300 = vmatpush1.bf16.msra.mxu1 %v3859_v53  ;;  %v2050_v52 = vld [vmem:[%s6008_s3 + $0x288] sm:$0xff] }
 0x108   :  { %3219 = vmatprep.subr.bf16.mxu0 %v3866_v54  ;;  %3301 = vmatprep.subr.bf16.mxu1 %v3868_v55  ;;  %v2054_v53 = vld [vmem:[%s6008_s3 + $0x2a8] sm:$0xff]  ;;  %v3921_v54 = vcombine.low %v2041_v41, %v2045_v42  ;;  %v3923_v55 = vcombine.low %v2042_v44, %v2046_v45 }
 0x109   :  { %v3932_v57 = vcombine.high %v2050_v52, %v2054_v53  ;;  %v2102_v41 = vld [vmem:[%s6008_s3 + $0x428] sm:$0xff] }
 0x10b   :  { %3220 = vmatpush1.bf16.msra.mxu0 %v3865_v60  ;;  %3302 = vmatpush1.bf16.msra.mxu1 %v3867_v61  ;;  %v2058_v60 = vld [vmem:[%s6008_s3 + $0x2c8] sm:$0xff] }
 0x10c   :  { %3221 = vmatprep.subr.bf16.mxu0 %v3874_v62  ;;  %3303 = vmatprep.subr.bf16.mxu1 %v3876_v63  ;;  %v2062_v61 = vld [vmem:[%s6008_s3 + $0x2e8] sm:$0xff]  ;;  %v3929_v62 = vcombine.low %v2049_v25, %v2053_v51  ;;  %v3931_v63 = vcombine.low %v2050_v52, %v2054_v53 }
 0x10d   :  { %v3940_v1 = vcombine.high %v2058_v60, %v2062_v61 }
 0x10f   :  { %3222 = vmatpush1.bf16.msra.mxu0 %v3873_v4  ;;  %3304 = vmatpush1.bf16.msra.mxu1 %v3875_v5  ;;  %v2066_v4 = vld [vmem:[%s6008_s3 + $0x308] sm:$0xff] }
 0x110   :  { %3223 = vmatprep.subr.bf16.mxu0 %v3882_v6  ;;  %3305 = vmatprep.subr.bf16.mxu1 %v3884_v7  ;;  %v2070_v5 = vld [vmem:[%s6008_s3 + $0x328] sm:$0xff]  ;;  %v3937_v6 = vcombine.low %v2057_v58, %v2061_v59  ;;  %v3939_v7 = vcombine.low %v2058_v60, %v2062_v61 }
 0x111   :  { %v3948_v10 = vcombine.high %v2066_v4, %v2070_v5 }
 0x113   :  { %3224 = vmatpush1.bf16.msra.mxu0 %v3881_v14  ;;  %3306 = vmatpush1.bf16.msra.mxu1 %v3883_v15  ;;  %v2074_v14 = vld [vmem:[%s6008_s3 + $0x348] sm:$0xff] }
 0x114   :  { %3225 = vmatprep.subr.bf16.mxu0 %v3890_v16  ;;  %3307 = vmatprep.subr.bf16.mxu1 %v3892_v18  ;;  %v2078_v15 = vld [vmem:[%s6008_s3 + $0x368] sm:$0xff]  ;;  %v3945_v16 = vcombine.low %v2065_v2, %v2069_v3  ;;  %v3947_v18 = vcombine.low %v2066_v4, %v2070_v5  ;;  %v2105_v2 = vld [vmem:[%s6008_s3 + $0x440] sm:$0xff] }
 0x115   :  { %v3956_v20 = vcombine.high %v2074_v14, %v2078_v15  ;;  %v3955_v22 = vcombine.low %v2074_v14, %v2078_v15  ;;  %v2109_v4 = vld [vmem:[%s6008_s3 + $0x460] sm:$0xff]  ;;  %v2106_v5 = vld [vmem:[%s6008_s3 + $0x448] sm:$0xff] }
 0x116   :  { %v3986_v11 = vcombine.high %v2105_v2, %v2109_v4  ;;  %v2117_v14 = vld [vmem:[%s6008_s3 + $0x4a0] sm:$0xff]  ;;  %v2114_v15 = vld [vmem:[%s6008_s3 + $0x488] sm:$0xff] }
 0x117   :  { %3226 = vmatpush1.bf16.msra.mxu0 %v3889_v23  ;;  %3308 = vmatpush1.bf16.msra.mxu1 %v3891_v24  ;;  %v2081_v23 = vld [vmem:[%s6008_s3 + $0x380] sm:$0xff] }
 0x118   :  { %3227 = vmatprep.subr.bf16.mxu0 %v3898_v12  ;;  %3309 = vmatprep.subr.bf16.mxu1 %v3900_v26  ;;  %v2085_v24 = vld [vmem:[%s6008_s3 + $0x3a0] sm:$0xff]  ;;  %v2082_v12 = vld [vmem:[%s6008_s3 + $0x388] sm:$0xff] }
 0x119   :  { %v3962_v26 = vcombine.high %v2081_v23, %v2085_v24  ;;  %v3961_v27 = vcombine.low %v2081_v23, %v2085_v24  ;;  %v3963_v28 = vcombine.low %v2082_v12, %v2086_v9  ;;  %v3964_v29 = vcombine.high %v2082_v12, %v2086_v9  ;;  %v2121_v23 = vld [vmem:[%s6008_s3 + $0x4c0] sm:$0xff]  ;;  %v2122_v12 = vld [vmem:[%s6008_s3 + $0x4c8] sm:$0xff] }
 0x11a   :  { %v2125_v24 = vld [vmem:[%s6008_s3 + $0x4e0] sm:$0xff] }
 0x11b   :  { %3228 = vmatpush1.bf16.msra.mxu0 %v3897_v30  ;;  %3310 = vmatpush1.bf16.msra.mxu1 %v3899_v31  ;;  %v2089_v30 = vld [vmem:[%s6008_s3 + $0x3c0] sm:$0xff] }
 0x11c   :  { %3229 = vmatprep.subr.bf16.mxu0 %v3906_v32  ;;  %3311 = vmatprep.subr.bf16.mxu1 %v3908_v33  ;;  %v2093_v31 = vld [vmem:[%s6008_s3 + $0x3e0] sm:$0xff]  ;;  %v2090_v32 = vld [vmem:[%s6008_s3 + $0x3c8] sm:$0xff] }
 0x11d   :  { %v3970_v33 = vcombine.high %v2089_v30, %v2093_v31  ;;  %v3969_v34 = vcombine.low %v2089_v30, %v2093_v31  ;;  %v3971_v35 = vcombine.low %v2090_v32, %v2094_v17  ;;  %v3972_v36 = vcombine.high %v2090_v32, %v2094_v17  ;;  %v2129_v30 = vld [vmem:[%s6008_s3 + $0x500] sm:$0xff]  ;;  %v2130_v32 = vld [vmem:[%s6008_s3 + $0x508] sm:$0xff] }
 0x11e   :  { %v2133_v31 = vld [vmem:[%s6008_s3 + $0x520] sm:$0xff]  ;;  %v4001_v17 = vcombine.low %v2121_v23, %v2125_v24 }
 0x11f   :  { %3230 = vmatpush1.bf16.msra.mxu0 %v3905_v37  ;;  %3312 = vmatpush1.bf16.msra.mxu1 %v3907_v38  ;;  %v2097_v37 = vld [vmem:[%s6008_s3 + $0x400] sm:$0xff] }
 0x120   :  { %3231 = vmatprep.subr.bf16.mxu0 %v3914_v39  ;;  %3313 = vmatprep.subr.bf16.mxu1 %v3916_v40  ;;  %v2101_v38 = vld [vmem:[%s6008_s3 + $0x420] sm:$0xff]  ;;  %v2098_v39 = vld [vmem:[%s6008_s3 + $0x408] sm:$0xff] }
 0x121   :  { %v3978_v40 = vcombine.high %v2097_v37, %v2101_v38  ;;  %v3977_v42 = vcombine.low %v2097_v37, %v2101_v38  ;;  %v3979_v44 = vcombine.low %v2098_v39, %v2102_v41  ;;  %v3980_v45 = vcombine.high %v2098_v39, %v2102_v41  ;;  %v2137_v37 = vld [vmem:[%s6008_s3 + $0x540] sm:$0xff]  ;;  %v2138_v39 = vld [vmem:[%s6008_s3 + $0x548] sm:$0xff] }
 0x122   :  { %v2141_v38 = vld [vmem:[%s6008_s3 + $0x560] sm:$0xff]  ;;  %v4009_v41 = vcombine.low %v2129_v30, %v2133_v31 }
 0x123   :  { %3232 = vmatpush1.bf16.msra.mxu0 %v3913_v46  ;;  %3314 = vmatpush1.bf16.msra.mxu1 %v3915_v47  ;;  %v335_v46 = vsub.s32 0, %v4640_v43  ;;  %v5537_v47 = vld [vmem:[%s6009_s2] sm:$0xf] }
 0x124   :  { %3233 = vmatprep.subr.bf16.mxu0 %v3922_v48  ;;  %3315 = vmatprep.subr.bf16.mxu1 %v3924_v50  ;;  %v339_v48 = vsub.s32 1, %v4640_v43  ;;  %v347_v50 = vsub.s32 3, %v4640_v43 }
 0x125   :  { %v336_v25 = vrot.slane %v5537_v47, %v335_v46 }
 0x126   :  { %v340_v51 = vrot.slane %v5537_v47, %v339_v48  ;;  %v348_v52 = vrot.slane %v5537_v47, %v347_v50 }
 0x127   :  { %3234 = vmatpush1.bf16.msra.mxu0 %v3921_v54  ;;  %3316 = vmatpush1.bf16.msra.mxu1 %v3923_v55 }
 0x128   :  { %3235 = vmatprep.subr.bf16.mxu0 %v3930_v56  ;;  %3317 = vmatprep.subr.bf16.mxu1 %v3932_v57 }
 0x12b   :  { %3236 = vmatpush1.bf16.msra.mxu0 %v3929_v62  ;;  %3318 = vmatpush1.bf16.msra.mxu1 %v3931_v63 }
 0x12c   :  { %3237 = vmatprep.subr.bf16.mxu0 %v3938_v0  ;;  %3319 = vmatprep.subr.bf16.mxu1 %v3940_v1 }
 0x12f   :  { %3238 = vmatpush1.bf16.msra.mxu0 %v3937_v6  ;;  %3320 = vmatpush1.bf16.msra.mxu1 %v3939_v7  ;;  %v2110_v6 = vld [vmem:[%s6008_s3 + $0x468] sm:$0xff] }
 0x130   :  { %3239 = vmatprep.subr.bf16.mxu0 %v3946_v8  ;;  %3321 = vmatprep.subr.bf16.mxu1 %v3948_v10  ;;  %v2113_v10 = vld [vmem:[%s6008_s3 + $0x480] sm:$0xff]  ;;  %v3988_v13 = vcombine.high %v2106_v5, %v2110_v6 }
 0x131   :  { %v3993_v9 = vcombine.low %v2113_v10, %v2117_v14 }
 0x133   :  { %3240 = vmatpush1.bf16.msra.mxu0 %v3945_v16  ;;  %3322 = vmatpush1.bf16.msra.mxu1 %v3947_v18  ;;  %v2118_v16 = vld [vmem:[%s6008_s3 + $0x4a8] sm:$0xff] }
 0x134   :  { %3241 = vmatprep.subr.bf16.mxu0 %v3954_v19  ;;  %3323 = vmatprep.subr.bf16.mxu1 %v3956_v20  ;;  %v3985_v19 = vcombine.low %v2105_v2, %v2109_v4  ;;  %v3987_v20 = vcombine.low %v2106_v5, %v2110_v6  ;;  %v2161_v5 = vld [vmem:[%s6008_s3 + $0x600] sm:$0xff] }
 0x135   :  { %v2165_v6 = vld [vmem:[%s6008_s3 + $0x620] sm:$0xff] }
 0x137   :  { %3242 = vmatpush1.bf16.msra.mxu0 %v3953_v21  ;;  %3324 = vmatpush1.bf16.msra.mxu1 %v3955_v22  ;;  %v3994_v21 = vcombine.high %v2113_v10, %v2117_v14  ;;  %v3996_v22 = vcombine.high %v2114_v15, %v2118_v16  ;;  %v2162_v10 = vld [vmem:[%s6008_s3 + $0x608] sm:$0xff] }
 0x138   :  { %3243 = vmatprep.subr.bf16.mxu0 %v3962_v26  ;;  %3325 = vmatprep.subr.bf16.mxu1 %v3964_v29  ;;  %v2126_v26 = vld [vmem:[%s6008_s3 + $0x4e8] sm:$0xff] }
 0x139   :  { %v4004_v29 = vcombine.high %v2122_v12, %v2126_v26 }
 0x13b   :  { %3244 = vmatpush1.bf16.msra.mxu0 %v3961_v27  ;;  %3326 = vmatpush1.bf16.msra.mxu1 %v3963_v28  ;;  %v3995_v27 = vcombine.low %v2114_v15, %v2118_v16  ;;  %v4002_v28 = vcombine.high %v2121_v23, %v2125_v24  ;;  %v4042_v15 = vcombine.high %v2161_v5, %v2165_v6 }
 0x13c   :  { %3245 = vmatprep.subr.bf16.mxu0 %v3970_v33  ;;  %3327 = vmatprep.subr.bf16.mxu1 %v3972_v36  ;;  %v2134_v33 = vld [vmem:[%s6008_s3 + $0x528] sm:$0xff] }
 0x13d   :  { %v4012_v36 = vcombine.high %v2130_v32, %v2134_v33 }
 0x13f   :  { %3246 = vmatpush1.bf16.msra.mxu0 %v3969_v34  ;;  %3328 = vmatpush1.bf16.msra.mxu1 %v3971_v35  ;;  %v4003_v34 = vcombine.low %v2122_v12, %v2126_v26  ;;  %v4010_v35 = vcombine.high %v2129_v30, %v2133_v31 }
 0x140   :  { %3256 = vmatprep.subr.bf16.mxu0 %v3978_v40  ;;  %3338 = vmatprep.subr.bf16.mxu1 %v3980_v45  ;;  %v2142_v40 = vld [vmem:[%s6008_s3 + $0x568] sm:$0xff] }
 0x141   :  { %v4020_v45 = vcombine.high %v2138_v39, %v2142_v40 }
 0x1d5   :  { %v1790_v53 = vpop.f32.mrb[0].mxu0  ;;  %v5550_v54 = vpop.f32.mrb[0].mxu1 }
 0x1d6   :  { %v4053_v55 = vadd.f32 %v1790_v53, %v336_v25  ;;  %v1792_v56 = vpop.f32.mrb[1].mxu0  ;;  %v1956_v57 = vpop.f32.mrb[1].mxu1  ;;  %v2145_v25 = vld [vmem:[%s6008_s3 + $0x580] sm:$0xff]  ;;  %v2150_v53 = vld [vmem:[%s6008_s3 + $0x5a8] sm:$0xff] }
 0x1d7   :  { %v4054_v58 = vadd.f32 %v1792_v56, %v340_v51  ;;  %v4056_v59 = vadd.f32 %v1956_v57, %v348_v52  ;;  %v1794_v60 = vpop.f32.mrb[2].mxu0  ;;  %v1958_v61 = vpop.f32.mrb[2].mxu1  ;;  %v2149_v51 = vld [vmem:[%s6008_s3 + $0x5a0] sm:$0xff]  ;;  %v2146_v52 = vld [vmem:[%s6008_s3 + $0x588] sm:$0xff]  ;;  %v4019_v56 = vcombine.low %v2138_v39, %v2142_v40  ;;  %v343_v57 = vsub.s32 2, %v4640_v43 }
 0x1d8   :  { %v1961_v62 = vmax.f32 %v4053_v55, 0.0  ;;  %v1795_v63 = vpop.f32.mrb[3].mxu0  ;;  %v1959_v0 = vpop.f32.mrb[3].mxu1  ;;  %v4017_v55 = vcombine.low %v2137_v37, %v2141_v38  ;;  %v2153_v60 = vld [vmem:[%s6008_s3 + $0x5c0] sm:$0xff] }
 0x1d9   :  { %v1962_v1 = vmax.f32 %v4054_v58, 0.0  ;;  %v1964_v3 = vmax.f32 %v4056_v59, 0.0  ;;  %v4026_v58 = vcombine.high %v2145_v25, %v2149_v51  ;;  %v4028_v59 = vcombine.high %v2146_v52, %v2150_v53  ;;  %v2157_v61 = vld [vmem:[%s6008_s3 + $0x5e0] sm:$0xff]  ;;  %v2158_v63 = vld [vmem:[%s6008_s3 + $0x5e8] sm:$0xff] }
 0x1da   :  { %v5566_v8 = vpack.c.bf16 %v1961_v62, %v1961_v62  ;;  %v2154_v62 = vld [vmem:[%s6008_s3 + $0x5c8] sm:$0xff]  ;;  %v4025_v0 = vcombine.low %v2145_v25, %v2149_v51  ;;  %v344_v2 = vrot.slane %v5537_v47, %v343_v57 }
 0x1db   :  { %v5564_v7 = vpack.c.bf16 %v1962_v1, %v1962_v1  ;;  %v5582_v18 = vpack.c.bf16 %v1964_v3, %v1964_v3  ;;  %v4027_v1 = vcombine.low %v2146_v52, %v2150_v53  ;;  %v4034_v3 = vcombine.high %v2153_v60, %v2157_v61  ;;  %v2166_v47 = vld [vmem:[%s6008_s3 + $0x628] sm:$0xff] }
 0x1dc   :  { %v4036_v4 = vcombine.high %v2154_v62, %v2158_v63  ;;  %v4055_v14 = vadd.f32 %v5550_v54, %v344_v2  ;;  %v4044_v16 = vcombine.high %v2162_v10, %v2166_v47  ;;  %v1976_v54 = vld [vmem:[%s6008_s3 + $0x38] sm:$0xff]  ;;  %v4043_v23 = vcombine.low %v2162_v10, %v2166_v47  ;;  %v2019_v47 = vld [vmem:[%s6008_s3 + $0x190] sm:$0xff] }
 0x1dd   :  { %3247 = vmatprep.mubr.bf16.mxu0 %v5564_v7  ;;  %3329 = vmatprep.mubr.bf16.mxu1 %v5564_v7  ;;  %v2012_v2 = vld [vmem:[%s6008_s3 + $0x158] sm:$0xff] }
 0x1de   :  { %3248 = vmatmul.mubr.bf16.vlgmr.msra.gmra.mrb[4].mxu0 %v5566_v8  ;;  %3330 = vmatmul.mubr.bf16.vlgmr.msra.gmra.mrb[4].mxu1 %v5566_v8  ;;  %v1963_v24 = vmax.f32 %v4055_v14, 0.0  ;;  %v2024_v14 = vld [vmem:[%s6008_s3 + $0x1b8] sm:$0xff] }
 0x1df   :  { %3257 = vmatpush1.bf16.msra.mxu0 %v3977_v42  ;;  %3339 = vmatpush1.bf16.msra.mxu1 %v3979_v44  ;;  %v4011_v42 = vcombine.low %v2130_v32, %v2134_v33  ;;  %v4018_v44 = vcombine.high %v2137_v37, %v2141_v38  ;;  %v1992_v37 = vld [vmem:[%s6008_s3 + $0xb8] sm:$0xff] }
 0x1e0   :  { %4049 = vmatprep.mubr.msk.bf16.mxu0 %vm3211_vm0, %v5582_v18  ;;  %4050 = vmatprep.mubr.msk.bf16.mxu1 %vm3211_vm0, %v5582_v18  ;;  %v5691_v31 = vpack.c.bf16 %v1963_v24, %v1963_v24 }
 0x1e1   :  { %3258 = vmatprep.subr.bf16.mxu0 %v3986_v11  ;;  %3340 = vmatprep.subr.bf16.mxu1 %v3988_v13  ;;  %v4033_v11 = vcombine.low %v2153_v60, %v2157_v61  ;;  %v4035_v13 = vcombine.low %v2154_v62, %v2158_v63 }
 0x1e3   :  { %3259 = vmatpush1.bf16.msra.mxu0 %v3985_v19  ;;  %3341 = vmatpush1.bf16.msra.mxu1 %v3987_v20  ;;  %v1971_v19 = vld [vmem:[%s6008_s3 + $0x10] sm:$0xff] }
 0x1e4   :  { %3260 = vmatprep.subr.bf16.mxu0 %v3994_v21  ;;  %3342 = vmatprep.subr.bf16.mxu1 %v3996_v22  ;;  %v1975_v20 = vld [vmem:[%s6008_s3 + $0x30] sm:$0xff]  ;;  %v1972_v21 = vld [vmem:[%s6008_s3 + $0x18] sm:$0xff]  ;;  %v4041_v22 = vcombine.low %v2161_v5, %v2165_v6 }
 0x1e5   :  { %v3854_v12 = vcombine.high %v1971_v19, %v1975_v20  ;;  %v3856_v26 = vcombine.high %v1972_v21, %v1976_v54  ;;  %v3853_v30 = vcombine.low %v1971_v19, %v1975_v20  ;;  %v3855_v32 = vcombine.low %v1972_v21, %v1976_v54  ;;  %v2027_v21 = vld [vmem:[%s6008_s3 + $0x1d0] sm:$0xff] }
 0x1e6   :  { %v2031_v54 = vld [vmem:[%s6008_s3 + $0x1f0] sm:$0xff] }
 0x1e7   :  { %3261 = vmatpush1.bf16.msra.mxu0 %v3993_v9  ;;  %3343 = vmatpush1.bf16.msra.mxu1 %v3995_v27  ;;  %v1979_v9 = vld [vmem:[%s6008_s3 + $0x50] sm:$0xff] }
 0x1e8   :  { %3262 = vmatprep.subr.bf16.mxu0 %v4002_v28  ;;  %3344 = vmatprep.subr.bf16.mxu1 %v4004_v29  ;;  %v1983_v27 = vld [vmem:[%s6008_s3 + $0x70] sm:$0xff]  ;;  %v1980_v28 = vld [vmem:[%s6008_s3 + $0x58] sm:$0xff] }
 0x1e9   :  { %v1984_v29 = vld [vmem:[%s6008_s3 + $0x78] sm:$0xff]  ;;  %v3862_v33 = vcombine.high %v1979_v9, %v1983_v27  ;;  %v3861_v38 = vcombine.low %v1979_v9, %v1983_v27  ;;  %v2035_v27 = vld [vmem:[%s6008_s3 + $0x210] sm:$0xff] }
 0x1ea   :  { %v3863_v39 = vcombine.low %v1980_v28, %v1984_v29 }
 0x1eb   :  { %3263 = vmatpush1.bf16.msra.mxu0 %v4001_v17  ;;  %3345 = vmatpush1.bf16.msra.mxu1 %v4003_v34  ;;  %v3864_v17 = vcombine.high %v1980_v28, %v1984_v29  ;;  %v1987_v34 = vld [vmem:[%s6008_s3 + $0x90] sm:$0xff]  ;;  %v2036_v29 = vld [vmem:[%s6008_s3 + $0x218] sm:$0xff] }
 0x1ec   :  { %3264 = vmatprep.subr.bf16.mxu0 %v4010_v35  ;;  %3346 = vmatprep.subr.bf16.mxu1 %v4012_v36  ;;  %v1991_v35 = vld [vmem:[%s6008_s3 + $0xb0] sm:$0xff]  ;;  %v1988_v36 = vld [vmem:[%s6008_s3 + $0x98] sm:$0xff] }
 0x1ed   :  { %v3870_v40 = vcombine.high %v1987_v34, %v1991_v35  ;;  %v3869_v25 = vcombine.low %v1987_v34, %v1991_v35  ;;  %v3871_v51 = vcombine.low %v1988_v36, %v1992_v37  ;;  %v2039_v28 = vld [vmem:[%s6008_s3 + $0x230] sm:$0xff] }
 0x1ee   :  { %v2043_v35 = vld [vmem:[%s6008_s3 + $0x250] sm:$0xff] }
 0x1ef   :  { %3265 = vmatpush1.bf16.msra.mxu0 %v4009_v41  ;;  %3347 = vmatpush1.bf16.msra.mxu1 %v4011_v42  ;;  %v3872_v41 = vcombine.high %v1988_v36, %v1992_v37  ;;  %v1995_v42 = vld [vmem:[%s6008_s3 + $0xd0] sm:$0xff]  ;;  %v2044_v37 = vld [vmem:[%s6008_s3 + $0x258] sm:$0xff] }
 0x1f0   :  { %3266 = vmatprep.subr.bf16.mxu0 %v4018_v44  ;;  %3348 = vmatprep.subr.bf16.mxu1 %v4020_v45  ;;  %v1999_v44 = vld [vmem:[%s6008_s3 + $0xf0] sm:$0xff]  ;;  %v1996_v45 = vld [vmem:[%s6008_s3 + $0xd8] sm:$0xff] }
 0x1f1   :  { %v3878_v52 = vcombine.high %v1995_v42, %v1999_v44  ;;  %v3877_v60 = vcombine.low %v1995_v42, %v1999_v44  ;;  %v2047_v36 = vld [vmem:[%s6008_s3 + $0x270] sm:$0xff] }
 0x1f2   :  { %v2051_v44 = vld [vmem:[%s6008_s3 + $0x290] sm:$0xff] }
 0x1f3   :  { %3267 = vmatpush1.bf16.msra.mxu0 %v4017_v55  ;;  %3349 = vmatpush1.bf16.msra.mxu1 %v4019_v56  ;;  %v2003_v55 = vld [vmem:[%s6008_s3 + $0x110] sm:$0xff] }
 0x1f4   :  { %3268 = vmatprep.subr.bf16.mxu0 %v4026_v58  ;;  %3350 = vmatprep.subr.bf16.mxu1 %v4028_v59  ;;  %v2007_v56 = vld [vmem:[%s6008_s3 + $0x130] sm:$0xff]  ;;  %v2004_v58 = vld [vmem:[%s6008_s3 + $0x118] sm:$0xff] }
 0x1f5   :  { %v2008_v59 = vld [vmem:[%s6008_s3 + $0x138] sm:$0xff]  ;;  %v3886_v62 = vcombine.high %v2003_v55, %v2007_v56 }
 0x1f6   :  { %v3888_v63 = vcombine.high %v2004_v58, %v2008_v59  ;;  %v3887_v5 = vcombine.low %v2004_v58, %v2008_v59  ;;  %v2063_v58 = vld [vmem:[%s6008_s3 + $0x2f0] sm:$0xff]  ;;  %v2060_v59 = vld [vmem:[%s6008_s3 + $0x2d8] sm:$0xff] }
 0x1f7   :  { %3269 = vmatpush1.bf16.msra.mxu0 %v4025_v0  ;;  %3351 = vmatpush1.bf16.msra.mxu1 %v4027_v1  ;;  %v2011_v0 = vld [vmem:[%s6008_s3 + $0x150] sm:$0xff] }
 0x1f8   :  { %3270 = vmatprep.subr.bf16.mxu0 %v4034_v3  ;;  %3352 = vmatprep.subr.bf16.mxu1 %v4036_v4  ;;  %v2015_v1 = vld [vmem:[%s6008_s3 + $0x170] sm:$0xff]  ;;  %v2016_v3 = vld [vmem:[%s6008_s3 + $0x178] sm:$0xff]  ;;  %v3885_v4 = vcombine.low %v2003_v55, %v2007_v56 }
 0x1f9   :  { %v3894_v6 = vcombine.high %v2011_v0, %v2015_v1  ;;  %v3896_v10 = vcombine.high %v2012_v2, %v2016_v3  ;;  %v2059_v56 = vld [vmem:[%s6008_s3 + $0x2d0] sm:$0xff] }
 0x1fb   :  { %3271 = vmatpush1.bf16.msra.mxu0 %v4033_v11  ;;  %3353 = vmatpush1.bf16.msra.mxu1 %v4035_v13  ;;  %v2023_v11 = vld [vmem:[%s6008_s3 + $0x1b0] sm:$0xff]  ;;  %v2020_v13 = vld [vmem:[%s6008_s3 + $0x198] sm:$0xff] }
 0x1fc   :  { %3272 = vmatprep.subr.bf16.mxu0 %v4042_v15  ;;  %3354 = vmatprep.subr.bf16.mxu1 %v4044_v16  ;;  %v3893_v15 = vcombine.low %v2011_v0, %v2015_v1  ;;  %v3895_v16 = vcombine.low %v2012_v2, %v2016_v3  ;;  %v3902_v19 = vcombine.high %v2019_v47, %v2023_v11  ;;  %v2067_v1 = vld [vmem:[%s6008_s3 + $0x310] sm:$0xff]  ;;  %v2068_v3 = vld [vmem:[%s6008_s3 + $0x318] sm:$0xff] }
 0x1fd   :  { %v3904_v20 = vcombine.high %v2020_v13, %v2024_v14  ;;  %v3901_v24 = vcombine.low %v2019_v47, %v2023_v11  ;;  %v2071_v2 = vld [vmem:[%s6008_s3 + $0x330] sm:$0xff] }
 0x1fe   :  { %v2075_v11 = vld [vmem:[%s6008_s3 + $0x350] sm:$0xff] }
 0x1ff   :  { %3273 = vmatpush1.bf16.msra.mxu0 %v4041_v22  ;;  %3355 = vmatpush1.bf16.msra.mxu1 %v4043_v23  ;;  %v2028_v22 = vld [vmem:[%s6008_s3 + $0x1d8] sm:$0xff] }
 0x200   :  { %3379 = vmatprep.subr.bf16.mxu0 %v3854_v12  ;;  %3461 = vmatprep.subr.bf16.mxu1 %v3856_v26  ;;  %v2032_v23 = vld [vmem:[%s6008_s3 + $0x1f8] sm:$0xff]  ;;  %v3903_v12 = vcombine.low %v2020_v13, %v2024_v14  ;;  %v3910_v26 = vcombine.high %v2027_v21, %v2031_v54  ;;  %v2079_v13 = vld [vmem:[%s6008_s3 + $0x370] sm:$0xff] }
 0x201   :  { %v3912_v9 = vcombine.high %v2028_v22, %v2032_v23  ;;  %v2076_v14 = vld [vmem:[%s6008_s3 + $0x358] sm:$0xff] }
 0x202   :  { %3289 = vmatmul.mubr.bf16.vlgmr.msra.gmra.mrb[4].mxu0 %v5691_v31  ;;  %3371 = vmatmul.mubr.bf16.vlgmr.msra.gmra.mrb[4].mxu1 %v5691_v31 }
 0x203   :  { %3380 = vmatpush1.bf16.msra.mxu0 %v3853_v30  ;;  %3411 = vmatprep.mubr.bf16.mxu0 %v5564_v7  ;;  %v2040_v30 = vld [vmem:[%s6008_s3 + $0x238] sm:$0xff] }
 0x204   :  { %3462 = vmatpush1.bf16.msra.mxu1 %v3855_v32  ;;  %3493 = vmatprep.mubr.bf16.mxu1 %v5564_v7  ;;  %v2000_v7 = vld [vmem:[%s6008_s3 + $0xf8] sm:$0xff]  ;;  %v3909_v32 = vcombine.low %v2027_v21, %v2031_v54  ;;  %v3920_v34 = vcombine.high %v2036_v29, %v2040_v30  ;;  %v2083_v54 = vld [vmem:[%s6008_s3 + $0x390] sm:$0xff] }
 0x205   :  { %3381 = vmatprep.subr.bf16.mxu0 %v3862_v33  ;;  %3463 = vmatprep.subr.bf16.mxu1 %v3864_v17  ;;  %v3880_v53 = vcombine.high %v1996_v45, %v2000_v7  ;;  %v3879_v61 = vcombine.low %v1996_v45, %v2000_v7  ;;  %v3911_v33 = vcombine.low %v2028_v22, %v2032_v23  ;;  %v2055_v45 = vld [vmem:[%s6008_s3 + $0x2b0] sm:$0xff]  ;;  %v2052_v7 = vld [vmem:[%s6008_s3 + $0x298] sm:$0xff] }
 0x206   :  { %v3918_v17 = vcombine.high %v2035_v27, %v2039_v28  ;;  %v2087_v22 = vld [vmem:[%s6008_s3 + $0x3b0] sm:$0xff]  ;;  %v2084_v23 = vld [vmem:[%s6008_s3 + $0x398] sm:$0xff] }
 0x207   :  { %3382 = vmatpush1.bf16.msra.mxu0 %v3861_v38  ;;  %v2048_v38 = vld [vmem:[%s6008_s3 + $0x278] sm:$0xff] }
 0x208   :  { %3464 = vmatpush1.bf16.msra.mxu1 %v3863_v39  ;;  %3383 = vmatprep.subr.bf16.mxu0 %v3870_v40  ;;  %v3917_v39 = vcombine.low %v2035_v27, %v2039_v28  ;;  %v3919_v40 = vcombine.low %v2036_v29, %v2040_v30  ;;  %v3928_v42 = vcombine.high %v2044_v37, %v2048_v38  ;;  %v2091_v28 = vld [vmem:[%s6008_s3 + $0x3d0] sm:$0xff]  ;;  %v2092_v30 = vld [vmem:[%s6008_s3 + $0x3d8] sm:$0xff] }
 0x209   :  { %3465 = vmatprep.subr.bf16.mxu1 %v3872_v41  ;;  %v3926_v41 = vcombine.high %v2043_v35, %v2047_v36  ;;  %v2095_v29 = vld [vmem:[%s6008_s3 + $0x3f0] sm:$0xff] }
 0x20b   :  { %3384 = vmatpush1.bf16.msra.mxu0 %v3869_v25  ;;  %v2056_v25 = vld [vmem:[%s6008_s3 + $0x2b8] sm:$0xff] }
 0x20c   :  { %3466 = vmatpush1.bf16.msra.mxu1 %v3871_v51  ;;  %3385 = vmatprep.subr.bf16.mxu0 %v3878_v52  ;;  %v3925_v51 = vcombine.low %v2043_v35, %v2047_v36  ;;  %v3927_v52 = vcombine.low %v2044_v37, %v2048_v38  ;;  %v3936_v55 = vcombine.high %v2052_v7, %v2056_v25  ;;  %v2099_v36 = vld [vmem:[%s6008_s3 + $0x410] sm:$0xff]  ;;  %v2100_v38 = vld [vmem:[%s6008_s3 + $0x418] sm:$0xff] }
 0x20d   :  { %3467 = vmatprep.subr.bf16.mxu1 %v3880_v53  ;;  %v3934_v53 = vcombine.high %v2051_v44, %v2055_v45  ;;  %v2103_v37 = vld [vmem:[%s6008_s3 + $0x430] sm:$0xff] }
 0x20f   :  { %3386 = vmatpush1.bf16.msra.mxu0 %v3877_v60  ;;  %v2064_v60 = vld [vmem:[%s6008_s3 + $0x2f8] sm:$0xff] }
 0x210   :  { %3468 = vmatpush1.bf16.msra.mxu1 %v3879_v61  ;;  %3387 = vmatprep.subr.bf16.mxu0 %v3886_v62  ;;  %v3933_v61 = vcombine.low %v2051_v44, %v2055_v45  ;;  %v3935_v62 = vcombine.low %v2052_v7, %v2056_v25  ;;  %v3944_v0 = vcombine.high %v2060_v59, %v2064_v60  ;;  %v2107_v45 = vld [vmem:[%s6008_s3 + $0x450] sm:$0xff] }
 0x211   :  { %3469 = vmatprep.subr.bf16.mxu1 %v3888_v63  ;;  %v3942_v63 = vcombine.high %v2059_v56, %v2063_v58  ;;  %v2111_v7 = vld [vmem:[%s6008_s3 + $0x470] sm:$0xff]  ;;  %v3981_v25 = vcombine.low %v2099_v36, %v2103_v37 }
 0x213   :  { %3388 = vmatpush1.bf16.msra.mxu0 %v3885_v4  ;;  %v2072_v4 = vld [vmem:[%s6008_s3 + $0x338] sm:$0xff] }
 0x214   :  { %3470 = vmatpush1.bf16.msra.mxu1 %v3887_v5  ;;  %3389 = vmatprep.subr.bf16.mxu0 %v3894_v6  ;;  %v3941_v5 = vcombine.low %v2059_v56, %v2063_v58  ;;  %v3943_v6 = vcombine.low %v2060_v59, %v2064_v60  ;;  %v3952_v47 = vcombine.high %v2068_v3, %v2072_v4  ;;  %v2115_v56 = vld [vmem:[%s6008_s3 + $0x490] sm:$0xff]  ;;  %v2116_v60 = vld [vmem:[%s6008_s3 + $0x498] sm:$0xff] }
 0x215   :  { %3471 = vmatprep.subr.bf16.mxu1 %v3896_v10  ;;  %v3950_v10 = vcombine.high %v2067_v1, %v2071_v2  ;;  %v2119_v58 = vld [vmem:[%s6008_s3 + $0x4b0] sm:$0xff] }
 0x217   :  { %3390 = vmatpush1.bf16.msra.mxu0 %v3893_v15  ;;  %v2080_v15 = vld [vmem:[%s6008_s3 + $0x378] sm:$0xff] }
 0x218   :  { %3472 = vmatpush1.bf16.msra.mxu1 %v3895_v16  ;;  %3391 = vmatprep.subr.bf16.mxu0 %v3902_v19  ;;  %v3949_v16 = vcombine.low %v2067_v1, %v2071_v2  ;;  %v3951_v19 = vcombine.low %v2068_v3, %v2072_v4  ;;  %v3960_v21 = vcombine.high %v2076_v14, %v2080_v15  ;;  %v2123_v2 = vld [vmem:[%s6008_s3 + $0x4d0] sm:$0xff]  ;;  %v2124_v3 = vld [vmem:[%s6008_s3 + $0x4d8] sm:$0xff] }
 0x219   :  { %3473 = vmatprep.subr.bf16.mxu1 %v3904_v20  ;;  %v3958_v20 = vcombine.high %v2075_v11, %v2079_v13  ;;  %v2128_v4 = vld [vmem:[%s6008_s3 + $0x4f8] sm:$0xff] }
 0x21b   :  { %3392 = vmatpush1.bf16.msra.mxu0 %v3901_v24  ;;  %v2088_v24 = vld [vmem:[%s6008_s3 + $0x3b8] sm:$0xff] }
 0x21c   :  { %3474 = vmatpush1.bf16.msra.mxu1 %v3903_v12  ;;  %3393 = vmatprep.subr.bf16.mxu0 %v3910_v26  ;;  %v3957_v12 = vcombine.low %v2075_v11, %v2079_v13  ;;  %v3959_v26 = vcombine.low %v2076_v14, %v2080_v15  ;;  %v3968_v27 = vcombine.high %v2084_v23, %v2088_v24  ;;  %v2135_v11 = vld [vmem:[%s6008_s3 + $0x530] sm:$0xff]  ;;  %v2132_v13 = vld [vmem:[%s6008_s3 + $0x518] sm:$0xff] }
 0x21d   :  { %3475 = vmatprep.subr.bf16.mxu1 %v3912_v9  ;;  %v3966_v9 = vcombine.high %v2083_v54, %v2087_v22  ;;  %v2136_v14 = vld [vmem:[%s6008_s3 + $0x538] sm:$0xff] }
 0x21f   :  { %3394 = vmatpush1.bf16.msra.mxu0 %v3909_v32  ;;  %v2096_v32 = vld [vmem:[%s6008_s3 + $0x3f8] sm:$0xff] }
 0x220   :  { %3476 = vmatpush1.bf16.msra.mxu1 %v3911_v33  ;;  %3395 = vmatprep.subr.bf16.mxu0 %v3918_v17  ;;  %v3965_v33 = vcombine.low %v2083_v54, %v2087_v22  ;;  %v3967_v17 = vcombine.low %v2084_v23, %v2088_v24  ;;  %v3976_v35 = vcombine.high %v2092_v30, %v2096_v32  ;;  %v2143_v54 = vld [vmem:[%s6008_s3 + $0x570] sm:$0xff]  ;;  %v2140_v22 = vld [vmem:[%s6008_s3 + $0x558] sm:$0xff] }
 0x221   :  { %3477 = vmatprep.subr.bf16.mxu1 %v3920_v34  ;;  %v3974_v34 = vcombine.high %v2091_v28, %v2095_v29  ;;  %v2144_v23 = vld [vmem:[%s6008_s3 + $0x578] sm:$0xff] }
 0x223   :  { %3396 = vmatpush1.bf16.msra.mxu0 %v3917_v39  ;;  %v2104_v39 = vld [vmem:[%s6008_s3 + $0x438] sm:$0xff] }
 0x224   :  { %3478 = vmatpush1.bf16.msra.mxu1 %v3919_v40  ;;  %3397 = vmatprep.subr.bf16.mxu0 %v3926_v41  ;;  %v3973_v40 = vcombine.low %v2091_v28, %v2095_v29  ;;  %v3975_v41 = vcombine.low %v2092_v30, %v2096_v32  ;;  %v3984_v44 = vcombine.high %v2100_v38, %v2104_v39  ;;  %v2151_v28 = vld [vmem:[%s6008_s3 + $0x5b0] sm:$0xff]  ;;  %v2148_v29 = vld [vmem:[%s6008_s3 + $0x598] sm:$0xff] }
 0x225   :  { %3479 = vmatprep.subr.bf16.mxu1 %v3928_v42  ;;  %v3982_v42 = vcombine.high %v2099_v36, %v2103_v37  ;;  %v2152_v30 = vld [vmem:[%s6008_s3 + $0x5b8] sm:$0xff]  ;;  %v2159_v36 = vld [vmem:[%s6008_s3 + $0x5f0] sm:$0xff] }
 0x226   :  { %v2156_v37 = vld [vmem:[%s6008_s3 + $0x5d8] sm:$0xff] }
 0x227   :  { %3398 = vmatpush1.bf16.msra.mxu0 %v3925_v51  ;;  %v2108_v51 = vld [vmem:[%s6008_s3 + $0x458] sm:$0xff] }
 0x228   :  { %3480 = vmatpush1.bf16.msra.mxu1 %v3927_v52  ;;  %3399 = vmatprep.subr.bf16.mxu0 %v3934_v53  ;;  %v2112_v52 = vld [vmem:[%s6008_s3 + $0x478] sm:$0xff]  ;;  %v3983_v53 = vcombine.low %v2100_v38, %v2104_v39 }
 0x229   :  { %3481 = vmatprep.subr.bf16.mxu1 %v3936_v55  ;;  %v3990_v55 = vcombine.high %v2107_v45, %v2111_v7  ;;  %v3992_v59 = vcombine.high %v2108_v51, %v2112_v52  ;;  %v2160_v38 = vld [vmem:[%s6008_s3 + $0x5f8] sm:$0xff] }
 0x22b   :  { %3400 = vmatpush1.bf16.msra.mxu0 %v3933_v61  ;;  %v2120_v61 = vld [vmem:[%s6008_s3 + $0x4b8] sm:$0xff] }
 0x22c   :  { %3482 = vmatpush1.bf16.msra.mxu1 %v3935_v62  ;;  %3401 = vmatprep.subr.bf16.mxu0 %v3942_v63  ;;  %v3989_v62 = vcombine.low %v2107_v45, %v2111_v7  ;;  %v3991_v63 = vcombine.low %v2108_v51, %v2112_v52  ;;  %v4000_v1 = vcombine.high %v2116_v60, %v2120_v61  ;;  %v2167_v45 = vld [vmem:[%s6008_s3 + $0x630] sm:$0xff]  ;;  %v2164_v7 = vld [vmem:[%s6008_s3 + $0x618] sm:$0xff] }
 0x22d   :  { %3483 = vmatprep.subr.bf16.mxu1 %v3944_v0  ;;  %v3998_v0 = vcombine.high %v2115_v56, %v2119_v58  ;;  %v4039_v52 = vcombine.low %v2156_v37, %v2160_v38 }
 0x22f   :  { %3402 = vmatpush1.bf16.msra.mxu0 %v3941_v5  ;;  %v3999_v5 = vcombine.low %v2116_v60, %v2120_v61 }
 0x230   :  { %3484 = vmatpush1.bf16.msra.mxu1 %v3943_v6  ;;  %3403 = vmatprep.subr.bf16.mxu0 %v3950_v10  ;;  %v4008_v10 = vcombine.high %v2124_v3, %v2128_v4 }
 0x231   :  { %3485 = vmatprep.subr.bf16.mxu1 %v3952_v47  ;;  %v2131_v47 = vld [vmem:[%s6008_s3 + $0x510] sm:$0xff] }
 0x232   :  { %v4013_v24 = vcombine.low %v2131_v47, %v2135_v11 }
 0x233   :  { %3404 = vmatpush1.bf16.msra.mxu0 %v3949_v16  ;;  %v4007_v16 = vcombine.low %v2124_v3, %v2128_v4 }
 0x234   :  { %3486 = vmatpush1.bf16.msra.mxu1 %v3951_v19  ;;  %3405 = vmatprep.subr.bf16.mxu0 %v3958_v20  ;;  %v4014_v19 = vcombine.high %v2131_v47, %v2135_v11  ;;  %v4016_v20 = vcombine.high %v2132_v13, %v2136_v14 }
 0x235   :  { %3487 = vmatprep.subr.bf16.mxu1 %v3960_v21  ;;  %v2139_v21 = vld [vmem:[%s6008_s3 + $0x550] sm:$0xff] }
 0x236   :  { %v4021_v32 = vcombine.low %v2139_v21, %v2143_v54 }
 0x237   :  { %3406 = vmatpush1.bf16.msra.mxu0 %v3957_v12  ;;  %v4015_v12 = vcombine.low %v2132_v13, %v2136_v14  ;;  %v2197_v14 = vsub.s32 6, %v4640_v43 }
 0x238   :  { %3488 = vmatpush1.bf16.msra.mxu1 %v3959_v26  ;;  %3407 = vmatprep.subr.bf16.mxu0 %v3966_v9  ;;  %v4022_v26 = vcombine.high %v2139_v21, %v2143_v54  ;;  %v4024_v9 = vcombine.high %v2140_v22, %v2144_v23 }
 0x239   :  { %3489 = vmatprep.subr.bf16.mxu1 %v3968_v27  ;;  %v2147_v27 = vld [vmem:[%s6008_s3 + $0x590] sm:$0xff] }
 0x23a   :  { %v4029_v39 = vcombine.low %v2147_v27, %v2151_v28 }
 0x23b   :  { %3408 = vmatpush1.bf16.msra.mxu0 %v3965_v33  ;;  %v4023_v33 = vcombine.low %v2140_v22, %v2144_v23 }
 0x23c   :  { %3490 = vmatpush1.bf16.msra.mxu1 %v3967_v17  ;;  %3409 = vmatprep.subr.bf16.mxu0 %v3974_v34  ;;  %v4030_v17 = vcombine.high %v2147_v27, %v2151_v28  ;;  %v4032_v34 = vcombine.high %v2148_v29, %v2152_v30 }
 0x23d   :  { %3491 = vmatprep.subr.bf16.mxu1 %v3976_v35  ;;  %v2155_v35 = vld [vmem:[%s6008_s3 + $0x5d0] sm:$0xff] }
 0x23e   :  { %v4037_v51 = vcombine.low %v2155_v35, %v2159_v36 }
 0x23f   :  { %3410 = vmatpush1.bf16.msra.mxu0 %v3973_v40  ;;  %v4031_v40 = vcombine.low %v2148_v29, %v2152_v30 }
 0x240   :  { %3492 = vmatpush1.bf16.msra.mxu1 %v3975_v41  ;;  %3420 = vmatprep.subr.bf16.mxu0 %v3982_v42  ;;  %v4038_v41 = vcombine.high %v2155_v35, %v2159_v36  ;;  %v4040_v42 = vcombine.high %v2156_v37, %v2160_v38 }
 0x241   :  { %3502 = vmatprep.subr.bf16.mxu1 %v3984_v44  ;;  %v2163_v44 = vld [vmem:[%s6008_s3 + $0x610] sm:$0xff] }
 0x242   :  { %3412 = vmatmul.mubr.bf16.vlgmr.msra.gmra.mrb[8].mxu0 %v5566_v8 }
 0x243   :  { %3494 = vmatmul.mubr.bf16.vlgmr.msra.gmra.mrb[8].mxu1 %v5566_v8  ;;  %3421 = vmatpush1.bf16.msra.mxu0 %v3981_v25  ;;  %v2127_v8 = vld [vmem:[%s6008_s3 + $0x4f0] sm:$0xff]  ;;  %v2168_v25 = vld [vmem:[%s6008_s3 + $0x638] sm:$0xff] }
 0x244   :  { %4051 = vmatprep.mubr.msk.bf16.mxu0 %vm3211_vm0, %v5582_v18  ;;  %3503 = vmatpush1.bf16.msra.mxu1 %v3983_v53  ;;  %v4006_v6 = vcombine.high %v2123_v2, %v2127_v8  ;;  %v4005_v15 = vcombine.low %v2123_v2, %v2127_v8  ;;  %v4046_v53 = vcombine.high %v2163_v44, %v2167_v45 }
 0x245   :  { %4052 = vmatprep.mubr.msk.bf16.mxu1 %vm3211_vm0, %v5582_v18  ;;  %3422 = vmatprep.subr.bf16.mxu0 %v3990_v55  ;;  %v3997_v18 = vcombine.low %v2115_v56, %v2119_v58  ;;  %v4048_v55 = vcombine.high %v2164_v7, %v2168_v25  ;;  %v4045_v56 = vcombine.low %v2163_v44, %v2167_v45 }
 0x246   :  { %3504 = vmatprep.subr.bf16.mxu1 %v3992_v59  ;;  %v4047_v58 = vcombine.low %v2164_v7, %v2168_v25  ;;  %v2169_v59 = vld [vmem:[%s6010_s4] sm:$0xff] }
 0x247   :  { %3423 = vmatpush1.bf16.msra.mxu0 %v3989_v62  ;;  %v2174_v60 = vrot.slane %v2169_v59, %v335_v46  ;;  %v2182_v61 = vrot.slane %v2169_v59, %v343_v57  ;;  %v2178_v62 = vrot.slane %v2169_v59, %v339_v48 }
 0x248   :  { %3505 = vmatpush1.bf16.msra.mxu1 %v3991_v63  ;;  %3424 = vmatprep.subr.bf16.mxu0 %v3998_v0  ;;  %v2186_v63 = vrot.slane %v2169_v59, %v347_v50  ;;  %v2189_v50 = vsub.s32 4, %v4640_v43 }
 0x249   :  { %3506 = vmatprep.subr.bf16.mxu1 %v4000_v1 }
 0x24b   :  { %3425 = vmatpush1.bf16.msra.mxu0 %v3997_v18 }
 0x24c   :  { %3507 = vmatpush1.bf16.msra.mxu1 %v3999_v5  ;;  %3426 = vmatprep.subr.bf16.mxu0 %v4006_v6 }
 0x24d   :  { %3508 = vmatprep.subr.bf16.mxu1 %v4008_v10 }
 0x24f   :  { %3427 = vmatpush1.bf16.msra.mxu0 %v4005_v15  ;;  %v2193_v15 = vsub.s32 5, %v4640_v43 }
 0x250   :  { %3509 = vmatpush1.bf16.msra.mxu1 %v4007_v16  ;;  %3428 = vmatprep.subr.bf16.mxu0 %v4014_v19  ;;  %v2201_v16 = vsub.s32 7, %v4640_v43  ;;  %v2190_v19 = vrot.slane %v2169_v59, %v2189_v50 }
 0x251   :  { %3510 = vmatprep.subr.bf16.mxu1 %v4016_v20  ;;  %v2198_v20 = vrot.slane %v2169_v59, %v2197_v14  ;;  %v2194_v21 = vrot.slane %v2169_v59, %v2193_v15 }
 0x252   :  { %v2202_v54 = vrot.slane %v2169_v59, %v2201_v16 }
 0x253   :  { %3429 = vmatpush1.bf16.msra.mxu0 %v4013_v24 }
 0x254   :  { %3511 = vmatpush1.bf16.msra.mxu1 %v4015_v12  ;;  %3430 = vmatprep.subr.bf16.mxu0 %v4022_v26 }
 0x255   :  { %3512 = vmatprep.subr.bf16.mxu1 %v4024_v9 }
 0x257   :  { %3431 = vmatpush1.bf16.msra.mxu0 %v4021_v32 }
 0x258   :  { %3513 = vmatpush1.bf16.msra.mxu1 %v4023_v33  ;;  %3432 = vmatprep.subr.bf16.mxu0 %v4030_v17 }
 0x259   :  { %3514 = vmatprep.subr.bf16.mxu1 %v4032_v34 }
 0x25b   :  { %3433 = vmatpush1.bf16.msra.mxu0 %v4029_v39 }
 0x25c   :  { %3515 = vmatpush1.bf16.msra.mxu1 %v4031_v40  ;;  %3434 = vmatprep.subr.bf16.mxu0 %v4038_v41 }
 0x25d   :  { %3516 = vmatprep.subr.bf16.mxu1 %v4040_v42 }
 0x25f   :  { %3435 = vmatpush1.bf16.msra.mxu0 %v4037_v51 }
 0x260   :  { %3517 = vmatpush1.bf16.msra.mxu1 %v4039_v52  ;;  %3436 = vmatprep.subr.bf16.mxu0 %v4046_v53 }
 0x261   :  { %3518 = vmatprep.subr.bf16.mxu1 %v4048_v55 }
 0x263   :  { %3437 = vmatpush1.bf16.msra.mxu0 %v4045_v56 }
 0x264   :  { %3519 = vmatpush1.bf16.msra.mxu1 %v4047_v58 }
 0x266   :  { %3453 = vmatmul.mubr.bf16.vlgmr.msra.gmra.mrb[8].mxu0 %v5691_v31 }
 0x267   :  { %3535 = vmatmul.mubr.bf16.vlgmr.msra.gmra.mrb[8].mxu1 %v5691_v31 }
 0x2d5   :  { %v3290_v0 = vpop.f32.mrb[4].mxu0  ;;  %v3372_v1 = vpop.f32.mrb[4].mxu1 }
 0x2d6   :  { %v4057_v2 = vadd.f32 %v3290_v0, %v2174_v60  ;;  %v4059_v31 = vadd.f32 %v3372_v1, %v2182_v61  ;;  %v3292_v8 = vpop.f32.mrb[5].mxu0  ;;  %v3374_v3 = vpop.f32.mrb[5].mxu1 }
 0x2d7   :  { %v4058_v4 = vadd.f32 %v3292_v8, %v2178_v62  ;;  %v4060_v18 = vadd.f32 %v3374_v3, %v2186_v63  ;;  %v3294_v5 = vpop.f32.mrb[6].mxu0  ;;  %v3376_v6 = vpop.f32.mrb[6].mxu1 }
 0x2d8   :  { %v3295_v46 = vpop.f32.mrb[7].mxu0  ;;  %v3377_v10 = vpop.f32.mrb[7].mxu1 }
 0x2d9   :  { %v3551_v47 = vcombine.low %v4057_v2, %v4058_v4  ;;  %v3552_v57 = vcombine.low %v4059_v31, %v4060_v18 }
 0x2db   :  { %v3559_v11 = vrot.slane %v3551_v47, %v4658_v49  ;;  %v3566_v48 = vrot.slane %v3552_v57, %v4658_v49 }
 0x2dd   :  { %v3567_v13 = vcombine.low %v3559_v11, %v3566_v48 }
 0x2df   :  { %3587 = vst [vmem:[%s6011_s5] sm:$0xff] %v3567_v13 }
 0x339   :  { %v3454_v22 = vpop.f32.mrb[8].mxu0 }
 0x33a   :  { %v4061_v23 = vadd.f32 %v3454_v22, %v2190_v19  ;;  %v3536_v24 = vpop.f32.mrb[8].mxu1  ;;  %v3456_v12 = vpop.f32.mrb[9].mxu0 }
 0x33b   :  { %v4063_v26 = vadd.f32 %v3536_v24, %v2198_v20  ;;  %v4062_v9 = vadd.f32 %v3456_v12, %v2194_v21  ;;  %v3538_v27 = vpop.f32.mrb[9].mxu1  ;;  %v3458_v28 = vpop.f32.mrb[10].mxu0 }
 0x33c   :  { %v4064_v29 = vadd.f32 %v3538_v27, %v2202_v54  ;;  %v3540_v30 = vpop.f32.mrb[10].mxu1  ;;  %v3459_v32 = vpop.f32.mrb[11].mxu0 }
 0x33d   :  { %v3568_v33 = vcombine.low %v4061_v23, %v4062_v9  ;;  %v3541_v17 = vpop.f32.mrb[11].mxu1 }
 0x33e   :  { %v3569_v34 = vcombine.low %v4063_v26, %v4064_v29 }
 0x33f   :  { %v3576_v43 = vrot.slane %v3568_v33, %v4658_v49 }
 0x340   :  { %v3583_v35 = vrot.slane %v3569_v34, %v4658_v49 }
 0x342   :  { %v3584_v36 = vcombine.low %v3576_v43, %v3583_v35 }
 0x344   :  { %3588 = vst [vmem:[%s6011_s5 + $0x8] sm:$0xff] %v3584_v36 }

</bundles_post_ra>
